<compile_context>
chip_gen: v6e
topology: v6e:2x2x1
jax: 0.10.0
libtpu: 0.0.40
codegen_flags: <defaults>
</compile_context>

<pallas_src>
import functools

import jax
import jax.numpy as jnp
from jax.experimental import pallas as pl
from jax.experimental.pallas import tpu as pltpu

# Keep f32 matmuls at full precision (kernel and reference alike).
jax.config.update("jax_default_matmul_precision", "highest")


# --------------------------------------------------------------------------- #
# Kernels
# --------------------------------------------------------------------------- #
def _gat_proj_kernel(h_ref, w_ref, al_ref, ar_ref, z_ref, el_ref, er_ref):
    """Per row tile: z = h @ W_flat (heads fused), el/er via score matmuls."""
    z = jnp.dot(h_ref[...], w_ref[...], preferred_element_type=jnp.float32)
    z_ref[...] = z
    # Block-diagonal score matrices -> el[n, h] = sum_d z[n, h*D+d] * attn_l[h, d]
    el_ref[...] = jnp.dot(z, al_ref[...], preferred_element_type=jnp.float32)
    er_ref[...] = jnp.dot(z, ar_ref[...], preferred_element_type=jnp.float32)


def _gat_attn_kernel(z_ref, elt_ref, er_ref, adj_ref, o_ref, *,
                     heads, out_dim, negative_slope, row_tile, mean_heads, fast):
    """Masked edge softmax + aggregation for one destination-row tile."""
    row_start = pl.multiple_of(pl.program_id(0) * row_tile, row_tile)
    er_tile = er_ref[pl.ds(row_start, row_tile), :]              # (T, heads) f32

    # Single additive mask bias shared by all heads: 0 on edges, -1e30 off edges.
    neg_bias = (adj_ref[...].astype(jnp.float32) - 1.0) * 1e30   # (T, N) f32

    head_outs = []
    for hd in range(heads):                                      # small static loop
        lo = hd * out_dim
        z_h = z_ref[:, lo:lo + out_dim]                          # (N, D) f32/bf16
        el_row = elt_ref[hd:hd + 1, :]                           # (1, N) sources
        er_col = er_tile[:, hd:hd + 1]                           # (T, 1) destinations

        e = er_col + el_row                                      # (T, N): e[dst, src]
        e = jnp.maximum(e, negative_slope * e)                   # leaky_relu (slope<1)
        masked = e + neg_bias
        m = jnp.max(masked, axis=-1, keepdims=True)              # finite: self-loops
        p = jnp.exp(masked - m)                                  # exact 0 off-edge
        denom = jnp.sum(p, axis=-1, keepdims=True)               # >= 1 (row max -> 1)

        # Scale AFTER the aggregation matmul: a (T, D) multiply, not (T, N).
        p_feed = p.astype(jnp.bfloat16) if fast else p
        out_h = jnp.dot(p_feed, z_h, preferred_element_type=jnp.float32)
        if fast:
            inv = pl.reciprocal(jnp.maximum(denom, 1e-9), approx=True)
        else:
            inv = 1.0 / jnp.maximum(denom, 1e-9)
        head_outs.append(out_h * inv)                            # (T, D) f32

    if mean_heads:                                               # final layer: head mean
        acc = head_outs[0]
        for t in head_outs[1:]:
            acc = acc + t
        o_ref[...] = (acc * (1.0 / heads)).astype(o_ref.dtype)
    else:                                                        # hidden: .flatten(1)
        out = head_outs[0] if heads == 1 else jnp.concatenate(head_outs, axis=-1)
        o_ref[...] = out.astype(o_ref.dtype)


# --------------------------------------------------------------------------- #
# Wrappers
# --------------------------------------------------------------------------- #
def _round_up(x, m):
    return ((x + m - 1) // m) * m


def _pick_tiling(n):
    """Row tile (multiple of 16 for bf16 adj) and padded N.

    Cap at 256 rows per tile (fits v7x's 64 MiB VMEM with the (T, N) softmax
    temps) and aim for >= 2 tiles so the "parallel" grid axis actually shards
    across the two v7x TensorCores."""
    if n <= 16:
        tile = _round_up(max(n, 1), 16)
    else:
        tile = min(256, _round_up(pl.cdiv(n, 2), 16))
    n_pad = _round_up(n, tile)
    return tile, n_pad


def _attn_vmem_limit(n_pad, row_tile, heads, out_dim, fast):
    """Scoped VMEM limit derived from actual tile sizes (default is only 16/32 MiB)."""
    hd = heads * out_dim
    z_bytes = n_pad * hd * (2 if fast else 4)
    invariants = z_bytes + heads * n_pad * 4 + n_pad * heads * 4   # z + el_t + er
    adj_tile = row_tile * n_pad * 2                                 # bf16
    out_tile = row_tile * max(hd, out_dim) * 4
    temps = 5 * row_tile * n_pad * 4                                # e/masked/p/bias
    total = 2 * (invariants + adj_tile + out_tile) + temps + (4 << 20)
    return int(min(max(total, 32 << 20), 56 << 20))


def gat_conv(h, params, adj_p, negative_slope, fast, row_tile, mean_heads):
    """One GATConv layer over all heads on padded inputs.

    Returns (N_pad, heads*out_dim) head-last (== .flatten(1)), or
    (N_pad, out_dim) when mean_heads=True (final layer)."""
    W, attn_l, attn_r = params
    heads, in_dim, out_dim = W.shape
    n_pad = h.shape[0]
    assert n_pad % row_tile == 0
    num_tiles = n_pad // row_tile
    hd_dim = heads * out_dim

    # Head-last, lane-contiguous parameter layouts.
    w_flat = jnp.transpose(W, (1, 0, 2)).reshape(in_dim, hd_dim)
    eye = jnp.eye(heads, dtype=W.dtype)
    a_l = (attn_l.reshape(heads, out_dim, 1) * eye[:, None, :]).reshape(hd_dim, heads)
    a_r = (attn_r.reshape(heads, out_dim, 1) * eye[:, None, :]).reshape(hd_dim, heads)

    # ---- projection: z / el / er computed ONCE per layer (not per dst tile) ----
    z, el, er = pl.pallas_call(
        _gat_proj_kernel,
        out_shape=(jax.ShapeDtypeStruct((n_pad, hd_dim), jnp.float32),
                   jax.ShapeDtypeStruct((n_pad, heads), jnp.float32),
                   jax.ShapeDtypeStruct((n_pad, heads), jnp.float32)),
        grid_spec=pltpu.PrefetchScalarGridSpec(
            num_scalar_prefetch=0,
            grid=(num_tiles,),
            in_specs=[
                pl.BlockSpec((row_tile, in_dim), lambda i: (i, 0)),
                pl.BlockSpec((in_dim, hd_dim), lambda i: (0, 0)),
                pl.BlockSpec((hd_dim, heads), lambda i: (0, 0)),
                pl.BlockSpec((hd_dim, heads), lambda i: (0, 0)),
            ],
            out_specs=(
                pl.BlockSpec((row_tile, hd_dim), lambda i: (i, 0)),
                pl.BlockSpec((row_tile, heads), lambda i: (i, 0)),
                pl.BlockSpec((row_tile, heads), lambda i: (i, 0)),
            ),
        ),
        compiler_params=pltpu.CompilerParams(
            dimension_semantics=("parallel",)),
    )(h, w_flat, a_l, a_r)

    el_t = el.T                                   # (heads, N_pad) tiny XLA transpose
    z_src = z.astype(jnp.bfloat16) if fast else z  # cast once (not per head/tile)

    out_cols = out_dim if mean_heads else hd_dim
    kernel = functools.partial(
        _gat_attn_kernel, heads=heads, out_dim=out_dim,
        negative_slope=negative_slope, row_tile=row_tile,
        mean_heads=mean_heads, fast=fast)

    # NOTE: the grid-invariant inputs (z_src, el_t, er) could additionally use
    # pipeline_mode=pl.Buffered(1) to drop their second VMEM buffer; the explicit
    # vmem limit below already leaves comfortable headroom at these sizes.
    return pl.pallas_call(
        kernel,
        out_shape=jax.ShapeDtypeStruct((n_pad, out_cols), jnp.float32),
        grid_spec=pltpu.PrefetchScalarGridSpec(
            num_scalar_prefetch=0,
            grid=(num_tiles,),
            in_specs=[
                pl.BlockSpec((n_pad, hd_dim), lambda i: (0, 0)),    # z (sources)
                pl.BlockSpec((heads, n_pad), lambda i: (0, 0)),     # el^T
                pl.BlockSpec((n_pad, heads), lambda i: (0, 0)),     # er
                pl.BlockSpec((row_tile, n_pad), lambda i: (i, 0)),  # adj row slab
            ],
            out_specs=pl.BlockSpec((row_tile, out_cols), lambda i: (i, 0)),
        ),
        compiler_params=pltpu.CompilerParams(
            dimension_semantics=("parallel",),
            vmem_limit_bytes=_attn_vmem_limit(n_pad, row_tile, heads, out_dim, fast)),
    )(z_src, el_t, er, adj_p)


def gat_forward(x, adj, layer_params, negative_slope=0.2, fast=True):
    """Mirrors GAT.forward: hidden layers flatten heads, final layer means heads."""
    n = x.shape[0]
    row_tile, n_pad = _pick_tiling(n)
    if n_pad != n:
        # Pad once for all layers; padded rows/cols carry adj = 0 so they get zero
        # attention weight and are sliced off at the end.
        x = jnp.pad(x, ((0, n_pad - n), (0, 0)))
        adj = jnp.pad(adj, ((0, n_pad - n), (0, n_pad - n)))
    adj_p = adj.astype(jnp.bfloat16)          # 0/1 mask is exact in bf16

    h = x
    for l in range(len(layer_params) - 1):
        # Kernel emits (N_pad, heads*out_dim) head-last == DGL's .flatten(1).
        h = gat_conv(h, layer_params[l], adj_p, negative_slope, fast, row_tile,
                     mean_heads=False)
    out = gat_conv(h, layer_params[-1], adj_p, negative_slope, fast, row_tile,
                   mean_heads=True)            # head mean done in-kernel
    return out[:n]


# ---------------- pure-JAX reference (correctness check only) ----------------
def _gat_conv_ref(h, params, adj, negative_slope):
    W, al, ar = params
    z = jnp.einsum('ni,hio->hno', h, W, precision=jax.lax.Precision.HIGHEST)
    el = jnp.sum(z * al, axis=-1)
    er = jnp.sum(z * ar, axis=-1)
    e = er[:, :, None] + el[:, None, :]
    e = jnp.where(e >= 0.0, e, negative_slope * e)
    masked = jnp.where(adj[None] > 0.0, e, -1e30)
    p = jnp.exp(masked - jnp.max(masked, axis=-1, keepdims=True))
    p = jnp.where(adj[None] > 0.0, p, 0.0)
    alpha = p / jnp.maximum(jnp.sum(p, axis=-1, keepdims=True), 1e-9)
    return jnp.einsum('hds,hso->hdo', alpha, z, precision=jax.lax.Precision.HIGHEST)


def _gat_forward_ref(x, adj, layer_params, negative_slope):
    h = x
    for l in range(len(layer_params) - 1):
        out = _gat_conv_ref(h, layer_params[l], adj, negative_slope)
        h = jnp.transpose(out, (1, 0, 2)).reshape(out.shape[1], -1)
    out = _gat_conv_ref(h, layer_params[-1], adj, negative_slope)
    return jnp.mean(out, axis=0)


def _init_layer(key, in_dim, out_dim, heads):
    k1, k2, k3 = jax.random.split(key, 3)
    gain = jnp.sqrt(2.0)
    w_scale = gain * jnp.sqrt(2.0 / (in_dim + out_dim))
    a_scale = gain * jnp.sqrt(2.0 / (1.0 + out_dim))
    W = (w_scale * jax.random.normal(k1, (heads, in_dim, out_dim))).astype(jnp.float32)
    al = (a_scale * jax.random.normal(k2, (heads, 1, out_dim))).astype(jnp.float32)
    ar = (a_scale * jax.random.normal(k3, (heads, 1, out_dim))).astype(jnp.float32)
    return (W, al, ar)


if __name__ == "__main__":
    key = jax.random.PRNGKey(0)
    N, in_dim, num_hidden, num_classes = 32, 16, 8, 4
    num_layers = 2
    heads = [2, 2, 1]
    negative_slope = 0.2

    k_x, k_adj, k_p = jax.random.split(key, 3)
    x = jax.random.normal(k_x, (N, in_dim), dtype=jnp.float32)
    adj = (jax.random.uniform(k_adj, (N, N)) < 0.2).astype(jnp.float32)
    adj = jnp.maximum(adj, jnp.eye(N, dtype=jnp.float32))  # add self-loops

    # Layer dims exactly as GAT.__init__ builds them.
    dims_in = ([in_dim]
               + [num_hidden * heads[l - 1] for l in range(1, num_layers)]
               + [num_hidden * heads[-2]])
    dims_out = [num_hidden] * num_layers + [num_classes]
    keys = jax.random.split(k_p, num_layers + 1)
    layer_params = [
        _init_layer(keys[l], dims_in[l], dims_out[l], heads[l])
        for l in range(num_layers + 1)
    ]

    ref = _gat_forward_ref(x, adj, layer_params, negative_slope)

    # Precise path: f32 MXU feeds, exact reciprocal. Checked against the reference.
    fwd_precise = jax.jit(functools.partial(
        gat_forward, negative_slope=negative_slope, fast=False))
    logits = fwd_precise(x, adj, layer_params)
    jax.block_until_ready(logits)
    assert logits.shape == (N, num_classes)
    max_err = float(jnp.max(jnp.abs(logits - ref)))
    assert jnp.allclose(logits, ref, atol=1e-2, rtol=1e-2), (
        f"precise path mismatch (max abs err {max_err:.3e})")

    # Fast path: bf16 MXU aggregation feeds + approx reciprocal (inference path).
    fwd_fast = jax.jit(functools.partial(
        gat_forward, negative_slope=negative_slope, fast=True))
    logits_fast = fwd_fast(x, adj, layer_params)
    jax.block_until_ready(logits_fast)
    assert logits_fast.shape == (N, num_classes)
    assert bool(jnp.all(jnp.isfinite(logits_fast)))

    print("KERNEL_OK")
</pallas_src>

<mosaic_0001>
module attributes {stable_mosaic.version = 11 : i64} {
  func.func @_gat_proj_kernel(%arg0: i32, %arg1: memref<16x16xf32, #tpu.memory_space<vmem>>, %arg2: memref<16x16xf32, #tpu.memory_space<vmem>>, %arg3: memref<16x2xf32, #tpu.memory_space<vmem>>, %arg4: memref<16x2xf32, #tpu.memory_space<vmem>>, %arg5: memref<16x16xf32, #tpu.memory_space<vmem>>, %arg6: memref<16x2xf32, #tpu.memory_space<vmem>>, %arg7: memref<16x2xf32, #tpu.memory_space<vmem>>) attributes {dimension_semantics = [#tpu.dimension_semantics<parallel>], iteration_bounds = array<i64: 2>, scalar_prefetch = 0 : i64, scratch_operands = 0 : i64, tpu.core_type = #tpu.core_type<tc>, window_params = [{transform_indices = @transform_0, window_bounds = array<i64: 16, 16>}, {pipeline_mode = #tpu.pipeline_mode<synchronous>, transform_indices = @transform_1, window_bounds = array<i64: 16, 16>}, {pipeline_mode = #tpu.pipeline_mode<synchronous>, transform_indices = @transform_2, window_bounds = array<i64: 16, 2>}, {pipeline_mode = #tpu.pipeline_mode<synchronous>, transform_indices = @transform_3, window_bounds = array<i64: 16, 2>}, {transform_indices = @transform_4, window_bounds = array<i64: 16, 16>}, {transform_indices = @transform_5, window_bounds = array<i64: 16, 2>}, {transform_indices = @transform_6, window_bounds = array<i64: 16, 2>}]} {
    %c0 = arith.constant 0 : index
    %c0_0 = arith.constant 0 : index
    %0 = vector.load %arg1[%c0, %c0_0] : memref<16x16xf32, #tpu.memory_space<vmem>>, vector<16x16xf32>
    %c0_1 = arith.constant 0 : index
    %c0_2 = arith.constant 0 : index
    %1 = vector.load %arg2[%c0_1, %c0_2] : memref<16x16xf32, #tpu.memory_space<vmem>>, vector<16x16xf32>
    %cst = arith.constant dense<0.000000e+00> : vector<16x16xf32>
    %2 = tpu.matmul %0, %1, %cst {dimension_numbers = #tpu.dot_dimension_numbers<[1], [0], [0], [1], [0, 0, 1, 1], [], []>, precision = #tpu.contract_precision<fp32>} : vector<16x16xf32>, vector<16x16xf32>, vector<16x16xf32> -> vector<16x16xf32>
    %c0_3 = arith.constant 0 : index
    %c0_4 = arith.constant 0 : index
    %3 = vector.load %arg5[%c0_3, %c0_4] : memref<16x16xf32, #tpu.memory_space<vmem>>, vector<16x16xf32>
    tpu.vector_store %arg5[%c0_3, %c0_4], %2 {strides = array<i32>} : memref<16x16xf32, #tpu.memory_space<vmem>>, vector<16x16xf32>,
    %c0_5 = arith.constant 0 : index
    %c0_6 = arith.constant 0 : index
    %4 = vector.load %arg3[%c0_5, %c0_6] : memref<16x2xf32, #tpu.memory_space<vmem>>, vector<16x2xf32>
    %cst_7 = arith.constant dense<0.000000e+00> : vector<16x2xf32>
    %5 = tpu.matmul %2, %4, %cst_7 {dimension_numbers = #tpu.dot_dimension_numbers<[1], [0], [0], [1], [0, 0, 1, 1], [], []>, precision = #tpu.contract_precision<fp32>} : vector<16x16xf32>, vector<16x2xf32>, vector<16x2xf32> -> vector<16x2xf32>
    %c0_8 = arith.constant 0 : index
    %c0_9 = arith.constant 0 : index
    %6 = vector.load %arg6[%c0_8, %c0_9] : memref<16x2xf32, #tpu.memory_space<vmem>>, vector<16x2xf32>
    tpu.vector_store %arg6[%c0_8, %c0_9], %5 {strides = array<i32>} : memref<16x2xf32, #tpu.memory_space<vmem>>, vector<16x2xf32>,
    %c0_10 = arith.constant 0 : index
    %c0_11 = arith.constant 0 : index
    %7 = vector.load %arg4[%c0_10, %c0_11] : memref<16x2xf32, #tpu.memory_space<vmem>>, vector<16x2xf32>
    %cst_12 = arith.constant dense<0.000000e+00> : vector<16x2xf32>
    %8 = tpu.matmul %2, %7, %cst_12 {dimension_numbers = #tpu.dot_dimension_numbers<[1], [0], [0], [1], [0, 0, 1, 1], [], []>, precision = #tpu.contract_precision<fp32>} : vector<16x16xf32>, vector<16x2xf32>, vector<16x2xf32> -> vector<16x2xf32>
    %c0_13 = arith.constant 0 : index
    %c0_14 = arith.constant 0 : index
    %9 = vector.load %arg7[%c0_13, %c0_14] : memref<16x2xf32, #tpu.memory_space<vmem>>, vector<16x2xf32>
    tpu.vector_store %arg7[%c0_13, %c0_14], %8 {strides = array<i32>} : memref<16x2xf32, #tpu.memory_space<vmem>>, vector<16x2xf32>,
    return
  }
  func.func @transform_0(%arg0: i32) -> (i32, i32) {
    %c0_i32 = arith.constant 0 : i32
    %c0_i32_0 = arith.constant 0 : i32
    return %arg0, %c0_i32 : i32, i32
  }
  func.func @transform_1(%arg0: i32) -> (i32, i32) {
    %c0_i32 = arith.constant 0 : i32
    %c0_i32_0 = arith.constant 0 : i32
    %c0_i32_1 = arith.constant 0 : i32
    return %c0_i32, %c0_i32_0 : i32, i32
  }
  func.func @transform_2(%arg0: i32) -> (i32, i32) {
    %c0_i32 = arith.constant 0 : i32
    %c0_i32_0 = arith.constant 0 : i32
    %c0_i32_1 = arith.constant 0 : i32
    return %c0_i32, %c0_i32_0 : i32, i32
  }
  func.func @transform_3(%arg0: i32) -> (i32, i32) {
    %c0_i32 = arith.constant 0 : i32
    %c0_i32_0 = arith.constant 0 : i32
    %c0_i32_1 = arith.constant 0 : i32
    return %c0_i32, %c0_i32_0 : i32, i32
  }
  func.func @transform_4(%arg0: i32) -> (i32, i32) {
    %c0_i32 = arith.constant 0 : i32
    %c0_i32_0 = arith.constant 0 : i32
    return %arg0, %c0_i32 : i32, i32
  }
  func.func @transform_5(%arg0: i32) -> (i32, i32) {
    %c0_i32 = arith.constant 0 : i32
    %c0_i32_0 = arith.constant 0 : i32
    return %arg0, %c0_i32 : i32, i32
  }
  func.func @transform_6(%arg0: i32) -> (i32, i32) {
    %c0_i32 = arith.constant 0 : i32
    %c0_i32_0 = arith.constant 0 : i32
    return %arg0, %c0_i32 : i32, i32
  }
}

module attributes {stable_mosaic.version = 11 : i64} {
  func.func @_gat_proj_kernel(%arg0: i32, %arg1: memref<16x16xf32, #tpu.memory_space<vmem>>, %arg2: memref<16x4xf32, #tpu.memory_space<vmem>>, %arg3: memref<4x1xf32, #tpu.memory_space<vmem>>, %arg4: memref<4x1xf32, #tpu.memory_space<vmem>>, %arg5: memref<16x4xf32, #tpu.memory_space<vmem>>, %arg6: memref<16x1xf32, #tpu.memory_space<vmem>>, %arg7: memref<16x1xf32, #tpu.memory_space<vmem>>) attributes {dimension_semantics = [#tpu.dimension_semantics<parallel>], iteration_bounds = array<i64: 2>, scalar_prefetch = 0 : i64, scratch_operands = 0 : i64, tpu.core_type = #tpu.core_type<tc>, window_params = [{transform_indices = @transform_0, window_bounds = array<i64: 16, 16>}, {pipeline_mode = #tpu.pipeline_mode<synchronous>, transform_indices = @transform_1, window_bounds = array<i64: 16, 4>}, {pipeline_mode = #tpu.pipeline_mode<synchronous>, transform_indices = @transform_2, window_bounds = array<i64: 4, 1>}, {pipeline_mode = #tpu.pipeline_mode<synchronous>, transform_indices = @transform_3, window_bounds = array<i64: 4, 1>}, {transform_indices = @transform_4, window_bounds = array<i64: 16, 4>}, {transform_indices = @transform_5, window_bounds = array<i64: 16, 1>}, {transform_indices = @transform_6, window_bounds = array<i64: 16, 1>}]} {
    %c0 = arith.constant 0 : index
    %c0_0 = arith.constant 0 : index
    %0 = vector.load %arg1[%c0, %c0_0] : memref<16x16xf32, #tpu.memory_space<vmem>>, vector<16x16xf32>
    %c0_1 = arith.constant 0 : index
    %c0_2 = arith.constant 0 : index
    %1 = vector.load %arg2[%c0_1, %c0_2] : memref<16x4xf32, #tpu.memory_space<vmem>>, vector<16x4xf32>
    %cst = arith.constant dense<0.000000e+00> : vector<16x4xf32>
    %2 = tpu.matmul %0, %1, %cst {dimension_numbers = #tpu.dot_dimension_numbers<[1], [0], [0], [1], [0, 0, 1, 1], [], []>, precision = #tpu.contract_precision<fp32>} : vector<16x16xf32>, vector<16x4xf32>, vector<16x4xf32> -> vector<16x4xf32>
    %c0_3 = arith.constant 0 : index
    %c0_4 = arith.constant 0 : index
    %3 = vector.load %arg5[%c0_3, %c0_4] : memref<16x4xf32, #tpu.memory_space<vmem>>, vector<16x4xf32>
    tpu.vector_store %arg5[%c0_3, %c0_4], %2 {strides = array<i32>} : memref<16x4xf32, #tpu.memory_space<vmem>>, vector<16x4xf32>,
    %c0_5 = arith.constant 0 : index
    %c0_6 = arith.constant 0 : index
    %4 = vector.load %arg3[%c0_5, %c0_6] : memref<4x1xf32, #tpu.memory_space<vmem>>, vector<4x1xf32>
    %cst_7 = arith.constant dense<0.000000e+00> : vector<16x1xf32>
    %5 = tpu.matmul %2, %4, %cst_7 {dimension_numbers = #tpu.dot_dimension_numbers<[1], [0], [0], [1], [0, 0, 1, 1], [], []>, precision = #tpu.contract_precision<fp32>} : vector<16x4xf32>, vector<4x1xf32>, vector<16x1xf32> -> vector<16x1xf32>
    %c0_8 = arith.constant 0 : index
    %c0_9 = arith.constant 0 : index
    %6 = vector.load %arg6[%c0_8, %c0_9] : memref<16x1xf32, #tpu.memory_space<vmem>>, vector<16x1xf32>
    tpu.vector_store %arg6[%c0_8, %c0_9], %5 {strides = array<i32>} : memref<16x1xf32, #tpu.memory_space<vmem>>, vector<16x1xf32>,
    %c0_10 = arith.constant 0 : index
    %c0_11 = arith.constant 0 : index
    %7 = vector.load %arg4[%c0_10, %c0_11] : memref<4x1xf32, #tpu.memory_space<vmem>>, vector<4x1xf32>
    %cst_12 = arith.constant dense<0.000000e+00> : vector<16x1xf32>
    %8 = tpu.matmul %2, %7, %cst_12 {dimension_numbers = #tpu.dot_dimension_numbers<[1], [0], [0], [1], [0, 0, 1, 1], [], []>, precision = #tpu.contract_precision<fp32>} : vector<16x4xf32>, vector<4x1xf32>, vector<16x1xf32> -> vector<16x1xf32>
    %c0_13 = arith.constant 0 : index
    %c0_14 = arith.constant 0 : index
    %9 = vector.load %arg7[%c0_13, %c0_14] : memref<16x1xf32, #tpu.memory_space<vmem>>, vector<16x1xf32>
    tpu.vector_store %arg7[%c0_13, %c0_14], %8 {strides = array<i32>} : memref<16x1xf32, #tpu.memory_space<vmem>>, vector<16x1xf32>,
    return
  }
  func.func @transform_0(%arg0: i32) -> (i32, i32) {
    %c0_i32 = arith.constant 0 : i32
    %c0_i32_0 = arith.constant 0 : i32
    return %arg0, %c0_i32 : i32, i32
  }
  func.func @transform_1(%arg0: i32) -> (i32, i32) {
    %c0_i32 = arith.constant 0 : i32
    %c0_i32_0 = arith.constant 0 : i32
    %c0_i32_1 = arith.constant 0 : i32
    return %c0_i32, %c0_i32_0 : i32, i32
  }
  func.func @transform_2(%arg0: i32) -> (i32, i32) {
    %c0_i32 = arith.constant 0 : i32
    %c0_i32_0 = arith.constant 0 : i32
    %c0_i32_1 = arith.constant 0 : i32
    return %c0_i32, %c0_i32_0 : i32, i32
  }
  func.func @transform_3(%arg0: i32) -> (i32, i32) {
    %c0_i32 = arith.constant 0 : i32
    %c0_i32_0 = arith.constant 0 : i32
    %c0_i32_1 = arith.constant 0 : i32
    return %c0_i32, %c0_i32_0 : i32, i32
  }
  func.func @transform_4(%arg0: i32) -> (i32, i32) {
    %c0_i32 = arith.constant 0 : i32
    %c0_i32_0 = arith.constant 0 : i32
    return %arg0, %c0_i32 : i32, i32
  }
  func.func @transform_5(%arg0: i32) -> (i32, i32) {
    %c0_i32 = arith.constant 0 : i32
    %c0_i32_0 = arith.constant 0 : i32
    return %arg0, %c0_i32 : i32, i32
  }
  func.func @transform_6(%arg0: i32) -> (i32, i32) {
    %c0_i32 = arith.constant 0 : i32
    %c0_i32_0 = arith.constant 0 : i32
    return %arg0, %c0_i32 : i32, i32
  }
}

module attributes {stable_mosaic.version = 11 : i64} {
  func.func @_gat_attn_kernel(%arg0: i32, %arg1: memref<32x4xf32, #tpu.memory_space<vmem>>, %arg2: memref<1x32xf32, #tpu.memory_space<vmem>>, %arg3: memref<32x1xf32, #tpu.memory_space<vmem>>, %arg4: memref<16x32xbf16, #tpu.memory_space<vmem>>, %arg5: memref<16x4xf32, #tpu.memory_space<vmem>>) attributes {dimension_semantics = [#tpu.dimension_semantics<parallel>], iteration_bounds = array<i64: 2>, scalar_prefetch = 0 : i64, scratch_operands = 0 : i64, tpu.core_type = #tpu.core_type<tc>, window_params = [{pipeline_mode = #tpu.pipeline_mode<synchronous>, transform_indices = @transform_0, window_bounds = array<i64: 32, 4>}, {pipeline_mode = #tpu.pipeline_mode<synchronous>, transform_indices = @transform_1, window_bounds = array<i64: 1, 32>}, {pipeline_mode = #tpu.pipeline_mode<synchronous>, transform_indices = @transform_2, window_bounds = array<i64: 32, 1>}, {transform_indices = @transform_3, window_bounds = array<i64: 16, 32>}, {transform_indices = @transform_4, window_bounds = array<i64: 16, 4>}]} {
    %c16_i32 = arith.constant 16 : i32
    %0 = arith.muli %arg0, %c16_i32 : i32
    %1 = tpu.assume_multiple %0, 16 : i32
    %2 = arith.index_cast %1 : i32 to index
    %c0 = arith.constant 0 : index
    %3 = vector.load %arg3[%2, %c0] : memref<32x1xf32, #tpu.memory_space<vmem>>, vector<16x1xf32>
    %c0_0 = arith.constant 0 : index
    %c0_1 = arith.constant 0 : index
    %4 = vector.load %arg4[%c0_0, %c0_1] : memref<16x32xbf16, #tpu.memory_space<vmem>>, vector<16x32xbf16>
    %5 = arith.extf %4 : vector<16x32xbf16> to vector<16x32xf32>
    %cst = arith.constant 1.000000e+00 : f32
    %6 = vector.broadcast %cst : f32 to vector<16x32xf32>
    %7 = arith.subf %5, %6 : vector<16x32xf32>
    %cst_2 = arith.constant 1.000000e+30 : f32
    %8 = vector.broadcast %cst_2 : f32 to vector<16x32xf32>
    %9 = arith.mulf %7, %8 : vector<16x32xf32>
    %c0_3 = arith.constant 0 : index
    %c0_4 = arith.constant 0 : index
    %10 = vector.load %arg1[%c0_3, %c0_4] : memref<32x4xf32, #tpu.memory_space<vmem>>, vector<32x4xf32>
    %c0_5 = arith.constant 0 : index
    %c0_6 = arith.constant 0 : index
    %11 = vector.load %arg2[%c0_5, %c0_6] : memref<1x32xf32, #tpu.memory_space<vmem>>, vector<1x32xf32>
    %12 = vector.broadcast %3 : vector<16x1xf32> to vector<16x32xf32>
    %13 = vector.broadcast %11 : vector<1x32xf32> to vector<16x32xf32>
    %14 = arith.addf %12, %13 : vector<16x32xf32>
    %cst_7 = arith.constant 2.000000e-01 : f32
    %15 = vector.broadcast %cst_7 : f32 to vector<16x32xf32>
    %16 = arith.mulf %15, %14 : vector<16x32xf32>
    %17 = arith.maximumf %14, %16 : vector<16x32xf32>
    %18 = arith.addf %17, %9 : vector<16x32xf32>
    %cst_8 = arith.constant dense<0xFF800000> : vector<16xf32>
    %19 = vector.multi_reduction <maximumf>, %18, %cst_8 [1] : vector<16x32xf32> to vector<16xf32>
    %20 = vector.shape_cast %19 : vector<16xf32> to vector<16x1xf32>
    %21 = vector.broadcast %20 : vector<16x1xf32> to vector<16x32xf32>
    %22 = arith.subf %18, %21 : vector<16x32xf32>
    %23 = math.exp %22 : vector<16x32xf32>
    %cst_9 = arith.constant dense<0.000000e+00> : vector<16xf32>
    %24 = vector.multi_reduction <add>, %23, %cst_9 [1] : vector<16x32xf32> to vector<16xf32>
    %25 = vector.shape_cast %24 : vector<16xf32> to vector<16x1xf32>
    %cst_10 = arith.constant dense<0.000000e+00> : vector<16x4xf32>
    %26 = tpu.matmul %23, %10, %cst_10 {dimension_numbers = #tpu.dot_dimension_numbers<[1], [0], [0], [1], [0, 0, 1, 1], [], []>, precision = #tpu.contract_precision<fp32>} : vector<16x32xf32>, vector<32x4xf32>, vector<16x4xf32> -> vector<16x4xf32>
    %cst_11 = arith.constant 9.99999971E-10 : f32
    %27 = vector.broadcast %cst_11 : f32 to vector<16x1xf32>
    %28 = arith.maximumf %25, %27 : vector<16x1xf32>
    %cst_12 = arith.constant 1.000000e+00 : f32
    %29 = vector.broadcast %cst_12 : f32 to vector<16x1xf32>
    %30 = arith.divf %29, %28 : vector<16x1xf32>
    %31 = vector.broadcast %30 : vector<16x1xf32> to vector<16x4xf32>
    %32 = arith.mulf %26, %31 : vector<16x4xf32>
    %cst_13 = arith.constant 1.000000e+00 : f32
    %33 = vector.broadcast %cst_13 : f32 to vector<16x4xf32>
    %34 = arith.mulf %32, %33 : vector<16x4xf32>
    %c0_14 = arith.constant 0 : index
    %c0_15 = arith.constant 0 : index
    %35 = vector.load %arg5[%c0_14, %c0_15] : memref<16x4xf32, #tpu.memory_space<vmem>>, vector<16x4xf32>
    tpu.vector_store %arg5[%c0_14, %c0_15], %34 {strides = array<i32>} : memref<16x4xf32, #tpu.memory_space<vmem>>, vector<16x4xf32>,
    return
  }
  func.func @transform_0(%arg0: i32) -> (i32, i32) {
    %c0_i32 = arith.constant 0 : i32
    %c0_i32_0 = arith.constant 0 : i32
    %c0_i32_1 = arith.constant 0 : i32
    return %c0_i32, %c0_i32_0 : i32, i32
  }
  func.func @transform_1(%arg0: i32) -> (i32, i32) {
    %c0_i32 = arith.constant 0 : i32
    %c0_i32_0 = arith.constant 0 : i32
    %c0_i32_1 = arith.constant 0 : i32
    return %c0_i32, %c0_i32_0 : i32, i32
  }
  func.func @transform_2(%arg0: i32) -> (i32, i32) {
    %c0_i32 = arith.constant 0 : i32
    %c0_i32_0 = arith.constant 0 : i32
    %c0_i32_1 = arith.constant 0 : i32
    return %c0_i32, %c0_i32_0 : i32, i32
  }
  func.func @transform_3(%arg0: i32) -> (i32, i32) {
    %c0_i32 = arith.constant 0 : i32
    %c0_i32_0 = arith.constant 0 : i32
    return %arg0, %c0_i32 : i32, i32
  }
  func.func @transform_4(%arg0: i32) -> (i32, i32) {
    %c0_i32 = arith.constant 0 : i32
    %c0_i32_0 = arith.constant 0 : i32
    return %arg0, %c0_i32 : i32, i32
  }
}

module attributes {stable_mosaic.version = 11 : i64} {
  func.func @_gat_attn_kernel(%arg0: i32, %arg1: memref<32x16xf32, #tpu.memory_space<vmem>>, %arg2: memref<2x32xf32, #tpu.memory_space<vmem>>, %arg3: memref<32x2xf32, #tpu.memory_space<vmem>>, %arg4: memref<16x32xbf16, #tpu.memory_space<vmem>>, %arg5: memref<16x16xf32, #tpu.memory_space<vmem>>) attributes {dimension_semantics = [#tpu.dimension_semantics<parallel>], iteration_bounds = array<i64: 2>, scalar_prefetch = 0 : i64, scratch_operands = 0 : i64, tpu.core_type = #tpu.core_type<tc>, window_params = [{pipeline_mode = #tpu.pipeline_mode<synchronous>, transform_indices = @transform_0, window_bounds = array<i64: 32, 16>}, {pipeline_mode = #tpu.pipeline_mode<synchronous>, transform_indices = @transform_1, window_bounds = array<i64: 2, 32>}, {pipeline_mode = #tpu.pipeline_mode<synchronous>, transform_indices = @transform_2, window_bounds = array<i64: 32, 2>}, {transform_indices = @transform_3, window_bounds = array<i64: 16, 32>}, {transform_indices = @transform_4, window_bounds = array<i64: 16, 16>}]} {
    %c16_i32 = arith.constant 16 : i32
    %0 = arith.muli %arg0, %c16_i32 : i32
    %1 = tpu.assume_multiple %0, 16 : i32
    %2 = arith.index_cast %1 : i32 to index
    %c0 = arith.constant 0 : index
    %3 = vector.load %arg3[%2, %c0] : memref<32x2xf32, #tpu.memory_space<vmem>>, vector<16x2xf32>
    %c0_0 = arith.constant 0 : index
    %c0_1 = arith.constant 0 : index
    %4 = vector.load %arg4[%c0_0, %c0_1] : memref<16x32xbf16, #tpu.memory_space<vmem>>, vector<16x32xbf16>
    %5 = arith.extf %4 : vector<16x32xbf16> to vector<16x32xf32>
    %cst = arith.constant 1.000000e+00 : f32
    %6 = vector.broadcast %cst : f32 to vector<16x32xf32>
    %7 = arith.subf %5, %6 : vector<16x32xf32>
    %cst_2 = arith.constant 1.000000e+30 : f32
    %8 = vector.broadcast %cst_2 : f32 to vector<16x32xf32>
    %9 = arith.mulf %7, %8 : vector<16x32xf32>
    %c0_3 = arith.constant 0 : index
    %c0_4 = arith.constant 0 : index
    %10 = vector.load %arg1[%c0_3, %c0_4] : memref<32x16xf32, #tpu.memory_space<vmem>>, vector<32x8xf32>
    %c0_5 = arith.constant 0 : index
    %c0_6 = arith.constant 0 : index
    %11 = vector.load %arg2[%c0_5, %c0_6] : memref<2x32xf32, #tpu.memory_space<vmem>>, vector<1x32xf32>
    %12 = vector.extract_strided_slice %3 {offsets = [0, 0], sizes = [16, 1], strides = [1, 1]} : vector<16x2xf32> to vector<16x1xf32>
    %13 = vector.broadcast %12 : vector<16x1xf32> to vector<16x32xf32>
    %14 = vector.broadcast %11 : vector<1x32xf32> to vector<16x32xf32>
    %15 = arith.addf %13, %14 : vector<16x32xf32>
    %cst_7 = arith.constant 2.000000e-01 : f32
    %16 = vector.broadcast %cst_7 : f32 to vector<16x32xf32>
    %17 = arith.mulf %16, %15 : vector<16x32xf32>
    %18 = arith.maximumf %15, %17 : vector<16x32xf32>
    %19 = arith.addf %18, %9 : vector<16x32xf32>
    %cst_8 = arith.constant dense<0xFF800000> : vector<16xf32>
    %20 = vector.multi_reduction <maximumf>, %19, %cst_8 [1] : vector<16x32xf32> to vector<16xf32>
    %21 = vector.shape_cast %20 : vector<16xf32> to vector<16x1xf32>
    %22 = vector.broadcast %21 : vector<16x1xf32> to vector<16x32xf32>
    %23 = arith.subf %19, %22 : vector<16x32xf32>
    %24 = math.exp %23 : vector<16x32xf32>
    %cst_9 = arith.constant dense<0.000000e+00> : vector<16xf32>
    %25 = vector.multi_reduction <add>, %24, %cst_9 [1] : vector<16x32xf32> to vector<16xf32>
    %26 = vector.shape_cast %25 : vector<16xf32> to vector<16x1xf32>
    %cst_10 = arith.constant dense<0.000000e+00> : vector<16x8xf32>
    %27 = tpu.matmul %24, %10, %cst_10 {dimension_numbers = #tpu.dot_dimension_numbers<[1], [0], [0], [1], [0, 0, 1, 1], [], []>, precision = #tpu.contract_precision<fp32>} : vector<16x32xf32>, vector<32x8xf32>, vector<16x8xf32> -> vector<16x8xf32>
    %cst_11 = arith.constant 9.99999971E-10 : f32
    %28 = vector.broadcast %cst_11 : f32 to vector<16x1xf32>
    %29 = arith.maximumf %26, %28 : vector<16x1xf32>
    %cst_12 = arith.constant 1.000000e+00 : f32
    %30 = vector.broadcast %cst_12 : f32 to vector<16x1xf32>
    %31 = arith.divf %30, %29 : vector<16x1xf32>
    %32 = vector.broadcast %31 : vector<16x1xf32> to vector<16x8xf32>
    %33 = arith.mulf %27, %32 : vector<16x8xf32>
    %c0_13 = arith.constant 0 : index
    %c8 = arith.constant 8 : index
    %34 = vector.load %arg1[%c0_13, %c8] : memref<32x16xf32, #tpu.memory_space<vmem>>, vector<32x8xf32>
    %c1 = arith.constant 1 : index
    %c0_14 = arith.constant 0 : index
    %35 = vector.load %arg2[%c1, %c0_14] : memref<2x32xf32, #tpu.memory_space<vmem>>, vector<1x32xf32>
    %36 = vector.extract_strided_slice %3 {offsets = [0, 1], sizes = [16, 1], strides = [1, 1]} : vector<16x2xf32> to vector<16x1xf32>
    %37 = vector.broadcast %36 : vector<16x1xf32> to vector<16x32xf32>
    %38 = vector.broadcast %35 : vector<1x32xf32> to vector<16x32xf32>
    %39 = arith.addf %37, %38 : vector<16x32xf32>
    %cst_15 = arith.constant 2.000000e-01 : f32
    %40 = vector.broadcast %cst_15 : f32 to vector<16x32xf32>
    %41 = arith.mulf %40, %39 : vector<16x32xf32>
    %42 = arith.maximumf %39, %41 : vector<16x32xf32>
    %43 = arith.addf %42, %9 : vector<16x32xf32>
    %cst_16 = arith.constant dense<0xFF800000> : vector<16xf32>
    %44 = vector.multi_reduction <maximumf>, %43, %cst_16 [1] : vector<16x32xf32> to vector<16xf32>
    %45 = vector.shape_cast %44 : vector<16xf32> to vector<16x1xf32>
    %46 = vector.broadcast %45 : vector<16x1xf32> to vector<16x32xf32>
    %47 = arith.subf %43, %46 : vector<16x32xf32>
    %48 = math.exp %47 : vector<16x32xf32>
    %cst_17 = arith.constant dense<0.000000e+00> : vector<16xf32>
    %49 = vector.multi_reduction <add>, %48, %cst_17 [1] : vector<16x32xf32> to vector<16xf32>
    %50 = vector.shape_cast %49 : vector<16xf32> to vector<16x1xf32>
    %cst_18 = arith.constant dense<0.000000e+00> : vector<16x8xf32>
    %51 = tpu.matmul %48, %34, %cst_18 {dimension_numbers = #tpu.dot_dimension_numbers<[1], [0], [0], [1], [0, 0, 1, 1], [], []>, precision = #tpu.contract_precision<fp32>} : vector<16x32xf32>, vector<32x8xf32>, vector<16x8xf32> -> vector<16x8xf32>
    %cst_19 = arith.constant 9.99999971E-10 : f32
    %52 = vector.broadcast %cst_19 : f32 to vector<16x1xf32>
    %53 = arith.maximumf %50, %52 : vector<16x1xf32>
    %cst_20 = arith.constant 1.000000e+00 : f32
    %54 = vector.broadcast %cst_20 : f32 to vector<16x1xf32>
    %55 = arith.divf %54, %53 : vector<16x1xf32>
    %56 = vector.broadcast %55 : vector<16x1xf32> to vector<16x8xf32>
    %57 = arith.mulf %51, %56 : vector<16x8xf32>
    %58 = tpu.concatenate %33, %57 in 1 : vector<16x8xf32>, vector<16x8xf32> -> vector<16x16xf32>
    %c0_21 = arith.constant 0 : index
    %c0_22 = arith.constant 0 : index
    %59 = vector.load %arg5[%c0_21, %c0_22] : memref<16x16xf32, #tpu.memory_space<vmem>>, vector<16x16xf32>
    tpu.vector_store %arg5[%c0_21, %c0_22], %58 {strides = array<i32>} : memref<16x16xf32, #tpu.memory_space<vmem>>, vector<16x16xf32>,
    return
  }
  func.func @transform_0(%arg0: i32) -> (i32, i32) {
    %c0_i32 = arith.constant 0 : i32
    %c0_i32_0 = arith.constant 0 : i32
    %c0_i32_1 = arith.constant 0 : i32
    return %c0_i32, %c0_i32_0 : i32, i32
  }
  func.func @transform_1(%arg0: i32) -> (i32, i32) {
    %c0_i32 = arith.constant 0 : i32
    %c0_i32_0 = arith.constant 0 : i32
    %c0_i32_1 = arith.constant 0 : i32
    return %c0_i32, %c0_i32_0 : i32, i32
  }
  func.func @transform_2(%arg0: i32) -> (i32, i32) {
    %c0_i32 = arith.constant 0 : i32
    %c0_i32_0 = arith.constant 0 : i32
    %c0_i32_1 = arith.constant 0 : i32
    return %c0_i32, %c0_i32_0 : i32, i32
  }
  func.func @transform_3(%arg0: i32) -> (i32, i32) {
    %c0_i32 = arith.constant 0 : i32
    %c0_i32_0 = arith.constant 0 : i32
    return %arg0, %c0_i32 : i32, i32
  }
  func.func @transform_4(%arg0: i32) -> (i32, i32) {
    %c0_i32 = arith.constant 0 : i32
    %c0_i32_0 = arith.constant 0 : i32
    return %arg0, %c0_i32 : i32, i32
  }
}

</mosaic_0001>

<bundles_post_ra>
// kernel: gat_forward.11
= control target key start
LH: loop header
LB: loop body
LE: loop exit
PB: predicated region body
PF: predicated region fallthrough
CT: control target
= control target key end

     0   :  { %s1037_s15 = smov 0   ;;  %s1162_s0 = inlined_call_operand.vmem [shape: f32[32,4], index: 0, kind: input, shape index: {}]   ;;  %s1163_s1 = inlined_call_operand.vmem [shape: f32[1,32], index: 1, kind: input, shape index: {}]   ;;  %s1164_s2 = inlined_call_operand.vmem [shape: f32[32,1], index: 2, kind: input, shape index: {}]   ;;  %s1165_s3 = inlined_call_operand.vmem [shape: bf16[32,32], index: 3, kind: input, shape index: {}]   ;;  %s1166_s4 = inlined_call_operand.vmem [shape: f32[32,4], index: 4, kind: output, shape index: {}]  }
   0x1 LB: > { %s864_s16 = sadd.s32 4294967295, %s1009_s15   ;;  %p868_p0 = scmp.ge.s32.totalorder %s1009_s15, 1  ;;  %s1009_s15 = sphi %s1037_s15, %s14_s15  }
   0x2   : > { %p163_p1 = scmp.lt.s32.totalorder %s1009_s15, 3 }
   0x4   : > { %p164_p2 = pnand %p868_p0, %p163_p1 }
   0x5   : > { %s873_s17 = sshll.u32 (!%p164_p2), %s864_s16, 4  ;;  %s869_s21 = sshll.u32 (!%p164_p2), %s864_s16, 1 }
   0x6   : > { %167 = sbr.rel (%p164_p2) target bundleno = 537 (0x219), region = 36  ;;  %s202_s20 = scalar_lea.vmem (!%p164_p2), %s1164_s2, %s873_s17 }
   0x7   : > { %p190_p3 = scmp.lt.s32.totalorder (!%p164_p2), %s869_s21, 3 }
   0xb   : > { %v1011_v0 = vmov 0   ;;  %v203_v1 = vld [vmem:[%s202_s20] sm:$0xff]  ;;  %v204_v2 = vld [vmem:[%s202_s20 + $0x8] sm:$0xff]  ;;  %s1168_s21 = smov (!%p190_p3, %s869_s21), 3  ;;  %vm242_vm0 = vcmask 261120   ;;  %v216_v23 = vld [vmem:[%s1162_s0 + $0x18] sm:$0xff] }
   0xc   : > { %994 = vset.pattern.permute.xlu0 %v1011_v0  ;;  %s870_s22 = sshll.u32 %s1168_s21, 2  ;;  %v876_v5 = vld [vmem:[%s1163_s1] ss:$0 sm:$0xff]  ;;  %v1062_v24 = vand.u32 4294901760, %v216_v23  ;;  %v215_v25 = vld [vmem:[%s1162_s0 + $0x10] sm:$0xff]  ;;  %v214_v28 = vld [vmem:[%s1162_s0 + $0x8] sm:$0xff] }
   0xd   : > { %220 = vperm.xlu0 %994, %v203_v1   ;;  %s193_s25 = scalar_lea.vmem %s1165_s3, %s870_s22  ;;  %v1070_v27 = vand.u32 4294901760, %v215_v25  ;;  %v1083_v31 = vand.u32 4294901760, %v214_v28  ;;  %v213_v32 = vld [vmem:[%s1162_s0] sm:$0xff]  ;;  %s872_s10 = sshll.u32 %s1168_s21, 3  ;;  %vm803_vm1 = vcmask 31744  }
   0xe   : > { %v880_v3 = vld [vmem:[%s193_s25] sm:$0xff]   ;;  %v1068_v26 = vsub.f32 %v216_v23, %v1062_v24  ;;  %919 = vmatprep.subr.mxu0 %v1062_v24  ;;  %v1098_v36 = vand.u32 4294901760, %v213_v32  ;;  %s199_s13 = scalar_lea.vmem %s1166_s4, %s872_s10 }
   0xf   : > { %v881_v4 = vunpack.c.l.bf16 %v880_v3  ;;  %v882_v7 = vunpack.c.h.bf16 %v880_v3  ;;  %920 = vmatpush3.msra.mxu0 %v1062_v24  ;;  %v1081_v30 = vsub.f32 %v215_v25, %v1070_v27  ;;  %v1096_v35 = vsub.f32 %v214_v28, %v1083_v31 }
  0x10   : > { %v1078_v29 = vand.u32 4294901760, %v1068_v26  ;;  %921 = vmatprep.subr.mxu0 %v1070_v27  ;;  %v1108_v40 = vsub.f32 %v213_v32, %v1098_v36 }
  0x11   : > { %225 = vperm.xlu0 %994, %v204_v2   ;;  %v874_v6 = vadd.f32 -1.0, %v881_v4  ;;  %v875_v12 = vadd.f32 -1.0, %v882_v7  ;;  %922 = vmatpush3.msra.mxu0 %v1070_v27  ;;  %v1093_v34 = vand.u32 4294901760, %v1081_v30  ;;  %v1105_v39 = vand.u32 4294901760, %v1096_v35 }
  0x12   : > { %v384_v33 = vsub.f32 %v1068_v26, %v1078_v29  ;;  %923 = vmatprep.subr.mxu0 %v1083_v31  ;;  %v1115_v43 = vand.u32 4294901760, %v1108_v40 }
  0x13   : > { %v211_v11 = vmul.f32 1e+30, %v874_v6  ;;  %v212_v18 = vmul.f32 1e+30, %v875_v12  ;;  %924 = vmatpush3.msra.mxu0 %v1083_v31  ;;  %v391_v38 = vsub.f32 %v1081_v30, %v1093_v34  ;;  %v398_v42 = vsub.f32 %v1096_v35, %v1105_v39 }
  0x14   : > { %v385_v37 = vand.u32 4294901760, %v384_v33  ;;  %925 = vmatprep.subr.mxu0 %v1098_v36  ;;  %v405_v45 = vsub.f32 %v1108_v40, %v1115_v43 }
  0x15   : > { %926 = vmatpush3.msra.mxu0 %v1098_v36  ;;  %v392_v41 = vand.u32 4294901760, %v391_v38  ;;  %v399_v44 = vand.u32 4294901760, %v398_v42 }
  0x16   : > { %930 = vmatprep.subr.mxu1 %v385_v37  ;;  %941 = vmatprep.subr.mxu0 %v1068_v26  ;;  %v406_v46 = vand.u32 4294901760, %v405_v45 }
  0x17   : > { %931 = vmatpush3.msra.mxu1 %v385_v37 }
  0x18   : > { %932 = vmatprep.subr.mxu1 %v392_v41 }
  0x19   : > { %933 = vmatpush3.msra.mxu1 %v392_v41 }
  0x1a   : > { %934 = vmatprep.subr.mxu1 %v399_v44 }
  0x1b   : > { %935 = vmatpush3.msra.mxu1 %v399_v44 }
  0x1c   : > { %936 = vmatprep.subr.mxu1 %v406_v46 }
  0x1d   : > { %937 = vmatpush3.msra.mxu1 %v406_v46 }
  0x1e   : > { %952 = vmatprep.subr.mxu1 %v1062_v24 }
  0x88   : > { %v221_v8 = vpop.permute.xlu0 %220 }
  0x89   : > { %v234_v9 = vadd.f32 %v876_v5, %v221_v8 }
  0x8b   : > { %v236_v10 = vmul.f32 0.2, %v234_v9 }
  0x8c   : > { %v226_v13 = vpop.permute.xlu0 %225 }
  0x8d   : > { %v238_v14 = vmax.f32 %v234_v9, %v236_v10  ;;  %v235_v15 = vadd.f32 %v876_v5, %v226_v13 }
  0x8f   : > { %v237_v16 = vmul.f32 0.2, %v235_v15  ;;  %v240_v17 = vadd.f32 %v238_v14, %v211_v11 }
  0x91   : > { %v239_v19 = vmax.f32 %v235_v15, %v237_v16  ;;  %v243_v20 = vsel %vm242_vm0, %v240_v17, -inf }
  0x92   : > { %244 = vmax.xlane.f32.xlu1 %v243_v20 }
  0x93   : > { %v241_v21 = vadd.f32 %v239_v19, %v212_v18 }
  0x95   : > { %v246_v22 = vsel %vm242_vm0, %v241_v21, -inf }
  0x96   : > { %247 = vmax.xlane.f32.xlu1 %v246_v22 }
 0x11b   : > { %v245_v47 = vpop.xlane.xlu1 %244 }
 0x11c   : > { %v249_v48 = vsub.f32 %v240_v17, %v245_v47 }
 0x11e   : > { %v251_v49 = vmul.f32 1.442695, %v249_v48 }
 0x11f   : > { %v248_v50 = vpop.xlane.xlu1 %247 }
 0x120   : > { %995 = vpow2.f32 %v251_v49  ;;  %v250_v51 = vsub.f32 %v241_v21, %v248_v50 }
 0x122   : > { %v253_v52 = vmul.f32 1.442695, %v250_v51 }
 0x124   : > { %997 = vpow2.f32 %v253_v52 }
 0x12d   : > { %v996_v53 = vpop.eup %995 }
 0x12e   : > { %v255_v54 = vsel %vm242_vm0, %v996_v53, 0.0  ;;  %v262_v55 = vsel %vm242_vm0, %v996_v53, 0 }
 0x12f   : > { %256 = vadd.xlane.f32.xlu0 %v255_v54  ;;  %v336_v56 = vand.u32 4294901760, %v262_v55 }
 0x131   : > { %v998_v57 = vpop.eup %997  ;;  %938 = vmatprep.mubr.f32.mxu1 %v336_v56  ;;  %v337_v58 = vsub.f32 %v262_v55, %v336_v56 }
 0x132   : > { %v258_v59 = vsel %vm242_vm0, %v998_v57, 0.0  ;;  %v265_v60 = vsel %vm242_vm0, %v998_v57, 0 }
 0x133   : > { %259 = vadd.xlane.f32.xlu1 %v258_v59  ;;  %v346_v61 = vand.u32 4294901760, %v265_v60  ;;  %v338_v62 = vand.u32 4294901760, %v337_v58 }
 0x135   : > { %v347_v63 = vsub.f32 %v265_v60, %v346_v61  ;;  %939 = vmatmul.mubr.f32.vlgmr.msra.gmra.mxu1 %v346_v61  ;;  %v339_v0 = vsub.f32 %v337_v58, %v338_v62 }
 0x136   : > { %953 = vmatpush3.msra.mxu1 %v1062_v24  ;;  %960 = vmatprep.mubr.f32.mxu1 %v338_v62 }
 0x137   : > { %954 = vmatprep.subr.mxu1 %v1070_v27  ;;  %v340_v1 = vand.u32 4294901760, %v339_v0  ;;  %v348_v2 = vand.u32 4294901760, %v347_v63 }
 0x138   : > { %955 = vmatpush3.msra.mxu1 %v1070_v27 }
 0x139   : > { %956 = vmatprep.subr.mxu1 %v1083_v31  ;;  %927 = vmatprep.mubr.f32.mxu0 %v340_v1  ;;  %v349_v3 = vsub.f32 %v347_v63, %v348_v2 }
 0x13a   : > { %957 = vmatpush3.msra.mxu1 %v1083_v31 }
 0x13b   : > { %958 = vmatprep.subr.mxu1 %v1098_v36  ;;  %v350_v4 = vand.u32 4294901760, %v349_v3 }
 0x13c   : > { %959 = vmatpush3.msra.mxu1 %v1098_v36 }
 0x13d   : > { %961 = vmatmul.mubr.f32.vlgmr.msra.gmra.mxu1 %v348_v2  ;;  %974 = vmatprep.subr.mxu1 %v1062_v24 }
 0x13e   : > { %928 = vmatmul.mubr.f32.vlgmr.msra.gmra.mxu0 %v350_v4  ;;  %975 = vmatpush3.msra.mxu1 %v1062_v24 }
 0x13f   : > { %942 = vmatpush3.msra.mxu0 %v1068_v26  ;;  %982 = vmatprep.mubr.f32.mxu1 %v336_v56 }
 0x140   : > { %943 = vmatprep.subr.mxu0 %v1081_v30  ;;  %949 = vmatprep.mubr.f32.mxu0 %v337_v58 }
 0x141   : > { %976 = vmatprep.subr.mxu1 %v1070_v27  ;;  %944 = vmatpush3.msra.mxu0 %v1081_v30 }
 0x142   : > { %977 = vmatpush3.msra.mxu1 %v1070_v27  ;;  %945 = vmatprep.subr.mxu0 %v1096_v35 }
 0x143   : > { %978 = vmatprep.subr.mxu1 %v1083_v31  ;;  %946 = vmatpush3.msra.mxu0 %v1096_v35 }
 0x144   : > { %979 = vmatpush3.msra.mxu1 %v1083_v31  ;;  %947 = vmatprep.subr.mxu0 %v1108_v40 }
 0x145   : > { %980 = vmatprep.subr.mxu1 %v1098_v36  ;;  %948 = vmatpush3.msra.mxu0 %v1108_v40 }
 0x146   : > { %981 = vmatpush3.msra.mxu1 %v1098_v36  ;;  %950 = vmatmul.mubr.f32.vlgmr.msra.gmra.mxu0 %v347_v63 }
 0x147   : > { %963 = vmatprep.subr.mxu0 %v1078_v29  ;;  %983 = vmatmul.mubr.f32.vlgmr.msra.gmra.mxu1 %v346_v61 }
 0x148   : > { %964 = vmatpush3.msra.mxu0 %v1078_v29  ;;  %971 = vmatprep.mubr.f32.mxu0 %v336_v56 }
 0x149   : > { %965 = vmatprep.subr.mxu0 %v1093_v34 }
 0x14a   : > { %966 = vmatpush3.msra.mxu0 %v1093_v34 }
 0x14b   : > { %967 = vmatprep.subr.mxu0 %v1105_v39 }
 0x14c   : > { %968 = vmatpush3.msra.mxu0 %v1105_v39 }
 0x14d   : > { %969 = vmatprep.subr.mxu0 %v1115_v43 }
 0x14e   : > { %970 = vmatpush3.msra.mxu0 %v1115_v43 }
 0x14f   : > { %972 = vmatmul.mubr.f32.vlgmr.msra.gmra.mxu0 %v346_v61 }
 0x1b8   : > { %v257_v6 = vpop.xlane.xlu0 %256 }
 0x1b9   : > { %v795_v9 = vmax.f32 %v257_v6, 1e-09 }
 0x1bb   : > { %999 = vrcp.f32 %v795_v9 }
 0x1bc   : > { %v260_v7 = vpop.xlane.xlu1 %259 }
 0x1bd   : > { %v796_v11 = vmax.f32 %v260_v7, 1e-09 }
 0x1bf   : > { %1001 = vrcp.f32 %v796_v11 }
 0x1c8   : > { %v1000_v31 = vpop.eup %999 }
 0x1cc   : > { %v1002_v32 = vpop.eup %1001 }
 0x1f5   : > { %v940_v8 = vpop.f32.mrf.mxu1 }
 0x1f7   : > { %v443_v13 = vpop.f32.mrf.mxu1 }
 0x1fd   : > { %v962_v15 = vpop.f32.mrf.mxu1 }
 0x1fe   : > { %v929_v5 = vpop.f32.mrf.mxu0 }
 0x1ff   : > { %v450_v14 = vadd.f32 %v940_v8, %v929_v5  ;;  %v613_v20 = vpop.f32.mrf.mxu1 }
 0x200   : > { %v342_v10 = vpop.f32.mrf.mxu0 }
 0x201   : > { %v444_v17 = vadd.f32 %v443_v13, %v342_v10 }
 0x206   : > { %v951_v12 = vpop.f32.mrf.mxu0 }
 0x207   : > { %v537_v18 = vadd.f32 %v951_v12, %v450_v14  ;;  %v984_v22 = vpop.f32.mrf.mxu1 }
 0x208   : > { %v529_v16 = vpop.f32.mrf.mxu0 }
 0x209   : > { %v530_v19 = vadd.f32 %v529_v16, %v444_v17  ;;  %v622_v21 = vadd.f32 %v962_v15, %v537_v18  ;;  %v785_v28 = vpop.f32.mrf.mxu1 }
 0x20b   : > { %v614_v25 = vadd.f32 %v613_v20, %v530_v19 }
 0x20f   : > { %v973_v23 = vpop.f32.mrf.mxu0 }
 0x210   : > { %v711_v24 = vadd.f32 %v973_v23, %v622_v21 }
 0x211   : > { %v704_v26 = vpop.f32.mrf.mxu0 }
 0x212   : > { %v705_v27 = vadd.f32 %v704_v26, %v614_v25  ;;  %v792_v29 = vadd.f32 %v984_v22, %v711_v24 }
 0x214   : > { %v786_v30 = vadd.f32 %v785_v28, %v705_v27  ;;  %v802_v34 = vmul.f32 %v1002_v32, %v792_v29 }
 0x216   : > { %v801_v33 = vmul.f32 %v1000_v31, %v786_v30  ;;  %805 = vst.msk [vmem:[%s199_s13 + $0x8] sm:$0xff] %vm803_vm1, %v802_v34 }
 0x218   : > { %804 = vst.msk [vmem:[%s199_s13] sm:$0xff] %vm803_vm1, %v801_v33 }
 0x219 PF: > { %s14_s15 = sadd.s32 1, %s1009_s15  }
 0x21a   : > { %p11_p4 = scmp.ge.s32.totalorder %s14_s15, 4  }
 0x21c   :  { %13 = sbr.rel (!%p11_p4) target bundleno = 1 (0x1), region = 67 }

// kernel: gat_forward.10
= control target key start
LH: loop header
LB: loop body
LE: loop exit
PB: predicated region body
PF: predicated region fallthrough
CT: control target
= control target key end

     0   :  { %s2148_s21 = smov 0   ;;  %s2215_s0 = inlined_call_operand.vmem [shape: f32[32,16], index: 0, kind: input, shape index: {}]   ;;  %s2216_s1 = inlined_call_operand.vmem [shape: f32[16,4], index: 1, kind: input, shape index: {}]   ;;  %s2217_s2 = inlined_call_operand.vmem [shape: f32[4,1], index: 2, kind: input, shape index: {}]   ;;  %s2218_s3 = inlined_call_operand.vmem [shape: f32[4,1], index: 3, kind: input, shape index: {}]   ;;  %s2219_s4 = inlined_call_operand.vmem [shape: f32[32,4], index: 4, kind: output, shape index: {0}]   ;;  %s2220_s5 = inlined_call_operand.vmem [shape: f32[32,1], index: 5, kind: output, shape index: {1}]   ;;  %s2221_s6 = inlined_call_operand.vmem [shape: f32[32,1], index: 6, kind: output, shape index: {2}]  }
   0x1 LB: > { %s1920_s22 = sadd.s32 4294967295, %s2111_s21   ;;  %p1924_p0 = scmp.ge.s32.totalorder %s2111_s21, 1  ;;  %s2111_s21 = sphi %s2148_s21, %s17_s21  }
   0x2   : > { %p218_p1 = scmp.lt.s32.totalorder %s2111_s21, 3 }
   0x4   : > { %p219_p2 = pnand %p1924_p0, %p218_p1 }
   0x5   : > { %s1925_s27 = sshll.u32 (!%p219_p2), %s1920_s22, 1 }
   0x6   : > { %222 = sbr.rel (%p219_p2) target bundleno = 469 (0x1d5), region = 36  ;;  %p259_p3 = scmp.lt.s32.totalorder (!%p219_p2), %s1925_s27, 3 }
   0xb   : > { %v285_v0 = vld [vmem:[%s2216_s1 + $0x8] sm:$0xff]  ;;  %v284_v1 = vld [vmem:[%s2216_s1] sm:$0xff]  ;;  %s2223_s27 = smov (!%p259_p3, %s1925_s27), 3  ;;  %vm286_vm0 = vcmask 130048   ;;  %vm805_vm1 = vcmask 1043456   ;;  %vm795_vm2 = vcmask 31744  }
   0xc   : > { %v322_v2 = vand.u32 4294901760, %v285_v0  ;;  %v325_v3 = vand.u32 4294901760, %v284_v1  ;;  %s2162_s28 = sshll.u32 %s2223_s27, 3  ;;  %v798_v26 = vld [vmem:[%s2217_s2] sm:$0xf]  ;;  %vm1298_vm3 = vcmask 7168  }
   0xd   : > { %s262_s7 = scalar_lea.vmem %s2215_s0, %s2162_s28  ;;  %v807_v27 = vsel %vm805_vm1, %v798_v26, 0  ;;  %v1301_v35 = vld [vmem:[%s2218_s3] sm:$0xf]  ;;  %s268_s14 = scalar_lea.vmem %s2219_s4, %s2162_s28 }
   0xe   : > { %1995 = vmatprep.subr.mxu0 %v322_v2  ;;  %v410_v4 = vsub.f32 %v285_v0, %v322_v2  ;;  %v417_v5 = vsub.f32 %v284_v1, %v325_v3  ;;  %v282_v10 = vld [vmem:[%s262_s7] sm:$0xff]  ;;  %v283_v11 = vld [vmem:[%s262_s7 + $0x8] sm:$0xff]  ;;  %v840_v28 = vand.u32 4294901760, %v807_v27  ;;  %v1303_v39 = vsel %vm805_vm1, %v1301_v35, 0  ;;  %s274_s17 = scalar_lea.vmem %s2220_s5, %s2162_s28  ;;  %s280_s20 = scalar_lea.vmem %s2221_s6, %s2162_s28 }
   0xf   : > { %1996 = vmatpush3.msra.mxu0 %v322_v2  ;;  %v288_v12 = vsel %vm286_vm0, %v282_v10, 0  ;;  %v291_v13 = vsel %vm286_vm0, %v283_v11, 0  ;;  %v2184_v45 = vand.u32 4294901760, %v1303_v39 }
  0x10   : > { %v411_v6 = vand.u32 4294901760, %v410_v4  ;;  %1997 = vmatprep.subr.mxu0 %v325_v3  ;;  %v418_v7 = vand.u32 4294901760, %v417_v5  ;;  %v360_v16 = vand.u32 4294901760, %v288_v12  ;;  %v370_v17 = vand.u32 4294901760, %v291_v13 }
  0x11   : > { %1998 = vmatpush3.msra.mxu0 %v325_v3  ;;  %v2172_v29 = vsub.f32 %v807_v27, %v840_v28  ;;  %v1423_v53 = vsub.f32 %v1303_v39, %v2184_v45 }
  0x12   : > { %v412_v8 = vsub.f32 %v410_v4, %v411_v6  ;;  %v419_v9 = vsub.f32 %v417_v5, %v418_v7  ;;  %2009 = vmatprep.subr.mxu0 %v410_v4  ;;  %v361_v18 = vsub.f32 %v288_v12, %v360_v16  ;;  %2006 = vmatprep.mubr.f32.mxu1 %v360_v16 }
  0x13   : > { %v371_v19 = vsub.f32 %v291_v13, %v370_v17  ;;  %v2175_v30 = vand.u32 4294901760, %v2172_v29  ;;  %v1424_v60 = vand.u32 4294901760, %v1423_v53 }
  0x14   : > { %v413_v14 = vand.u32 4294901760, %v412_v8  ;;  %v420_v15 = vand.u32 4294901760, %v419_v9  ;;  %v362_v20 = vand.u32 4294901760, %v361_v18 }
  0x15   : > { %v372_v21 = vand.u32 4294901760, %v371_v19  ;;  %v929_v31 = vsub.f32 %v2172_v29, %v2175_v30  ;;  %v1425_v1 = vsub.f32 %v1423_v53, %v1424_v60 }
  0x16   : > { %2002 = vmatprep.subr.mxu1 %v413_v14  ;;  %v363_v22 = vsub.f32 %v361_v18, %v362_v20 }
  0x17   : > { %2003 = vmatpush3.msra.mxu1 %v413_v14  ;;  %v373_v23 = vsub.f32 %v371_v19, %v372_v21  ;;  %v930_v32 = vand.u32 4294901760, %v929_v31 }
  0x18   : > { %2004 = vmatprep.subr.mxu1 %v420_v15  ;;  %v364_v24 = vand.u32 4294901760, %v363_v22 }
  0x19   : > { %2005 = vmatpush3.msra.mxu1 %v420_v15  ;;  %v374_v25 = vand.u32 4294901760, %v373_v23 }
  0x1a   : > { %2007 = vmatmul.mubr.f32.vlgmr.msra.gmra.mxu1 %v370_v17  ;;  %2016 = vmatprep.subr.mxu1 %v322_v2 }
  0x1b   : > { %2017 = vmatpush3.msra.mxu1 %v322_v2  ;;  %2020 = vmatprep.mubr.f32.mxu1 %v362_v20 }
  0x1c   : > { %2018 = vmatprep.subr.mxu1 %v325_v3  ;;  %1999 = vmatprep.mubr.f32.mxu0 %v364_v24 }
  0x1d   : > { %2019 = vmatpush3.msra.mxu1 %v325_v3  ;;  %2000 = vmatmul.mubr.f32.vlgmr.msra.gmra.mxu0 %v374_v25 }
  0x1e   : > { %2021 = vmatmul.mubr.f32.vlgmr.msra.gmra.mxu1 %v372_v21  ;;  %2030 = vmatprep.subr.mxu1 %v322_v2 }
  0x1f   : > { %2010 = vmatpush3.msra.mxu0 %v410_v4  ;;  %2013 = vmatprep.mubr.f32.mxu0 %v361_v18 }
  0x20   : > { %2011 = vmatprep.subr.mxu0 %v417_v5  ;;  %2031 = vmatpush3.msra.mxu1 %v322_v2 }
  0x21   : > { %2012 = vmatpush3.msra.mxu0 %v417_v5  ;;  %2032 = vmatprep.subr.mxu1 %v325_v3 }
  0x22   : > { %2023 = vmatprep.subr.mxu0 %v411_v6  ;;  %2014 = vmatmul.mubr.f32.vlgmr.msra.gmra.mxu0 %v371_v19 }
  0x23   : > { %2024 = vmatpush3.msra.mxu0 %v411_v6  ;;  %2027 = vmatprep.mubr.f32.mxu0 %v360_v16  ;;  %v1426_v6 = vand.u32 4294901760, %v1425_v1 }
  0x24   : > { %2025 = vmatprep.subr.mxu0 %v418_v7  ;;  %2033 = vmatpush3.msra.mxu1 %v325_v3 }
  0x25   : > { %2026 = vmatpush3.msra.mxu0 %v418_v7  ;;  %2034 = vmatprep.mubr.f32.mxu1 %v360_v16 }
  0x26   : > { %2028 = vmatmul.mubr.f32.vlgmr.msra.gmra.mxu0 %v370_v17  ;;  %2035 = vmatmul.mubr.f32.vlgmr.msra.gmra.mxu1 %v370_v17 }
  0x27   : > { %2037 = vmatprep.subr.mxu0 %v840_v28  ;;  %2042 = vmatprep.subr.mxu1 %v930_v32 }
  0x28   : > { %2038 = vmatpush3.msra.mxu0 %v840_v28  ;;  %2043 = vmatpush3.msra.mxu1 %v930_v32 }
  0x29   : > { %2047 = vmatprep.subr.mxu0 %v2172_v29  ;;  %2052 = vmatprep.subr.mxu1 %v840_v28 }
  0xda   : > { %v2008_v33 = vpop.f32.mrf.mxu1 }
  0xdc   : > { %v457_v34 = vpop.f32.mrf.mxu1 }
  0xdd   : > { %v2001_v36 = vpop.f32.mrf.mxu0 }
  0xde   : > { %v2022_v37 = vpop.f32.mrf.mxu1  ;;  %v464_v40 = vadd.f32 %v2008_v33, %v2001_v36 }
  0xdf   : > { %v366_v38 = vpop.f32.mrf.mxu0 }
  0xe0   : > { %v621_v42 = vpop.f32.mrf.mxu1  ;;  %v458_v43 = vadd.f32 %v457_v34, %v366_v38 }
  0xe2   : > { %v2015_v41 = vpop.f32.mrf.mxu0 }
  0xe3   : > { %v547_v44 = vadd.f32 %v2015_v41, %v464_v40 }
  0xe4   : > { %v539_v46 = vpop.f32.mrf.mxu0 }
  0xe5   : > { %v630_v47 = vadd.f32 %v2022_v37, %v547_v44  ;;  %v540_v48 = vadd.f32 %v539_v46, %v458_v43 }
  0xe6   : > { %v2029_v49 = vpop.f32.mrf.mxu0  ;;  %v2036_v50 = vpop.f32.mrf.mxu1 }
  0xe7   : > { %v622_v51 = vadd.f32 %v621_v42, %v540_v48  ;;  %v713_v52 = vadd.f32 %v2029_v49, %v630_v47 }
  0xe8   : > { %v706_v54 = vpop.f32.mrf.mxu0  ;;  %v785_v57 = vpop.f32.mrf.mxu1 }
  0xe9   : > { %v792_v55 = vadd.f32 %v2036_v50, %v713_v52  ;;  %v707_v56 = vadd.f32 %v706_v54, %v622_v51 }
  0xeb   : > { %v803_v58 = vsel %vm795_vm2, %v792_v55, 0  ;;  %v786_v59 = vadd.f32 %v785_v57, %v707_v56  ;;  %797 = vst.msk [vmem:[%s268_s14 + $0x8] sm:$0xff] %vm795_vm2, %v792_v55 }
  0xec   : > { %v885_v61 = vand.u32 4294901760, %v803_v58 }
  0xed   : > { %796 = vst.msk [vmem:[%s268_s14] sm:$0xff] %vm795_vm2, %v786_v59  ;;  %v800_v62 = vsel %vm795_vm2, %v786_v59, 0 }
  0xee   : > { %v886_v63 = vsub.f32 %v803_v58, %v885_v61  ;;  %v875_v0 = vand.u32 4294901760, %v800_v62 }
  0xf0   : > { %v876_v2 = vsub.f32 %v800_v62, %v875_v0  ;;  %2044 = vmatprep.mubr.f32.mxu1 %v875_v0  ;;  %v887_v3 = vand.u32 4294901760, %v886_v63 }
  0xf1   : > { %2045 = vmatmul.mubr.f32.vlgmr.msra.gmra.mxu1 %v885_v61 }
  0xf2   : > { %2053 = vmatpush3.msra.mxu1 %v840_v28  ;;  %v877_v4 = vand.u32 4294901760, %v876_v2  ;;  %v888_v5 = vsub.f32 %v886_v63, %v887_v3 }
  0xf3   : > { %2062 = vmatprep.subr.mxu1 %v840_v28 }
  0xf4   : > { %2054 = vmatprep.mubr.f32.mxu1 %v877_v4  ;;  %v878_v7 = vsub.f32 %v876_v2, %v877_v4  ;;  %v889_v9 = vand.u32 4294901760, %v888_v5 }
  0xf5   : > { %2055 = vmatmul.mubr.f32.vlgmr.msra.gmra.mxu1 %v887_v3 }
  0xf6   : > { %2064 = vmatprep.mubr.f32.mxu1 %v875_v0  ;;  %v879_v8 = vand.u32 4294901760, %v878_v7  ;;  %2063 = vmatpush3.msra.mxu1 %v840_v28 }
  0xf7   : > { %2072 = vmatprep.subr.mxu1 %v1426_v6 }
  0xf8   : > { %2039 = vmatprep.mubr.f32.mxu0 %v879_v8 }
  0xf9   : > { %2040 = vmatmul.mubr.f32.vlgmr.msra.gmra.mxu0 %v889_v9  ;;  %2065 = vmatmul.mubr.f32.vlgmr.msra.gmra.mxu1 %v885_v61 }
  0xfa   : > { %2048 = vmatpush3.msra.mxu0 %v2172_v29  ;;  %2049 = vmatprep.mubr.f32.mxu0 %v876_v2 }
  0xfb   : > { %2074 = vmatprep.mubr.f32.mxu1 %v875_v0  ;;  %2057 = vmatprep.subr.mxu0 %v2175_v30 }
  0xfc   : > { %2073 = vmatpush3.msra.mxu1 %v1426_v6 }
  0xfd   : > { %2050 = vmatmul.mubr.f32.vlgmr.msra.gmra.mxu0 %v886_v63  ;;  %2075 = vmatmul.mubr.f32.vlgmr.msra.gmra.mxu1 %v885_v61 }
  0xfe   : > { %2058 = vmatpush3.msra.mxu0 %v2175_v30  ;;  %2059 = vmatprep.mubr.f32.mxu0 %v875_v0 }
  0xff   : > { %2084 = vmatprep.mubr.f32.mxu1 %v877_v4  ;;  %2082 = vmatprep.subr.mxu1 %v2184_v45 }
 0x100   : > { %2067 = vmatprep.subr.mxu0 %v2184_v45  ;;  %2083 = vmatpush3.msra.mxu1 %v2184_v45 }
 0x101   : > { %2060 = vmatmul.mubr.f32.vlgmr.msra.gmra.mxu0 %v885_v61  ;;  %2085 = vmatmul.mubr.f32.vlgmr.msra.gmra.mxu1 %v887_v3 }
 0x102   : > { %2068 = vmatpush3.msra.mxu0 %v2184_v45  ;;  %2069 = vmatprep.mubr.f32.mxu0 %v879_v8 }
 0x103   : > { %2094 = vmatprep.mubr.f32.mxu1 %v875_v0  ;;  %2092 = vmatprep.subr.mxu1 %v2184_v45 }
 0x104   : > { %2077 = vmatprep.subr.mxu0 %v1423_v53  ;;  %2093 = vmatpush3.msra.mxu1 %v2184_v45 }
 0x105   : > { %2070 = vmatmul.mubr.f32.vlgmr.msra.gmra.mxu0 %v889_v9  ;;  %2095 = vmatmul.mubr.f32.vlgmr.msra.gmra.mxu1 %v885_v61 }
 0x106   : > { %2078 = vmatpush3.msra.mxu0 %v1423_v53  ;;  %2079 = vmatprep.mubr.f32.mxu0 %v876_v2 }
 0x107   : > { %2087 = vmatprep.subr.mxu0 %v1424_v60 }
 0x109   : > { %2080 = vmatmul.mubr.f32.vlgmr.msra.gmra.mxu0 %v886_v63 }
 0x10a   : > { %2088 = vmatpush3.msra.mxu0 %v1424_v60  ;;  %2089 = vmatprep.mubr.f32.mxu0 %v875_v0 }
 0x10d   : > { %2090 = vmatmul.mubr.f32.vlgmr.msra.gmra.mxu0 %v885_v61 }
 0x1b1   : > { %v2046_v10 = vpop.f32.mrf.mxu1 }
 0x1b3   : > { %v967_v11 = vpop.f32.mrf.mxu1 }
 0x1b5   : > { %v2056_v12 = vpop.f32.mrf.mxu1 }
 0x1b7   : > { %v1128_v13 = vpop.f32.mrf.mxu1 }
 0x1b9   : > { %v2041_v14 = vpop.f32.mrf.mxu0  ;;  %v2066_v15 = vpop.f32.mrf.mxu1 }
 0x1ba   : > { %v974_v18 = vadd.f32 %v2046_v10, %v2041_v14 }
 0x1bb   : > { %v881_v16 = vpop.f32.mrf.mxu0  ;;  %v1288_v17 = vpop.f32.mrf.mxu1 }
 0x1bc   : > { %v968_v21 = vadd.f32 %v967_v11, %v881_v16 }
 0x1bd   : > { %v2051_v19 = vpop.f32.mrf.mxu0  ;;  %v2076_v20 = vpop.f32.mrf.mxu1 }
 0x1be   : > { %v1055_v22 = vadd.f32 %v2051_v19, %v974_v18 }
 0x1bf   : > { %v1047_v23 = vpop.f32.mrf.mxu0  ;;  %v1463_v26 = vpop.f32.mrf.mxu1 }
 0x1c0   : > { %v1048_v24 = vadd.f32 %v1047_v23, %v968_v21  ;;  %v1137_v25 = vadd.f32 %v2056_v12, %v1055_v22 }
 0x1c1   : > { %v2061_v27 = vpop.f32.mrf.mxu0  ;;  %v2086_v32 = vpop.f32.mrf.mxu1 }
 0x1c2   : > { %v1129_v28 = vadd.f32 %v1128_v13, %v1048_v24  ;;  %v1217_v29 = vadd.f32 %v2061_v27, %v1137_v25 }
 0x1c3   : > { %v1210_v30 = vpop.f32.mrf.mxu0  ;;  %v1624_v38 = vpop.f32.mrf.mxu1 }
 0x1c4   : > { %v1211_v31 = vadd.f32 %v1210_v30, %v1129_v28  ;;  %v1295_v35 = vadd.f32 %v2066_v15, %v1217_v29 }
 0x1c5   : > { %v2071_v33 = vpop.f32.mrf.mxu0  ;;  %v2096_v45 = vpop.f32.mrf.mxu1 }
 0x1c6   : > { %v1289_v34 = vadd.f32 %v1288_v17, %v1211_v31  ;;  %v1470_v37 = vadd.f32 %v2076_v20, %v2071_v33  ;;  %1300 = vst.msk [vmem:[%s274_s17 + $0x8] sm:$0xff] %vm1298_vm3, %v1295_v35 }
 0x1c7   : > { %v1377_v36 = vpop.f32.mrf.mxu0  ;;  %v1784_v51 = vpop.f32.mrf.mxu1 }
 0x1c8   : > { %1299 = vst.msk [vmem:[%s274_s17] sm:$0xff] %vm1298_vm3, %v1289_v34  ;;  %v1464_v40 = vadd.f32 %v1463_v26, %v1377_v36 }
 0x1c9   : > { %v2081_v39 = vpop.f32.mrf.mxu0 }
 0x1ca   : > { %v1551_v41 = vadd.f32 %v2081_v39, %v1470_v37 }
 0x1cb   : > { %v1543_v42 = vpop.f32.mrf.mxu0 }
 0x1cc   : > { %v1544_v43 = vadd.f32 %v1543_v42, %v1464_v40  ;;  %v1633_v44 = vadd.f32 %v2086_v32, %v1551_v41 }
 0x1cd   : > { %v2091_v46 = vpop.f32.mrf.mxu0 }
 0x1ce   : > { %v1625_v47 = vadd.f32 %v1624_v38, %v1544_v43  ;;  %v1713_v48 = vadd.f32 %v2091_v46, %v1633_v44 }
 0x1cf   : > { %v1706_v49 = vpop.f32.mrf.mxu0 }
 0x1d0   : > { %v1707_v50 = vadd.f32 %v1706_v49, %v1625_v47  ;;  %v1791_v53 = vadd.f32 %v2096_v45, %v1713_v48 }
 0x1d2   : > { %v1785_v52 = vadd.f32 %v1784_v51, %v1707_v50  ;;  %1795 = vst.msk [vmem:[%s280_s20 + $0x8] sm:$0xff] %vm1298_vm3, %v1791_v53 }
 0x1d4   : > { %1794 = vst.msk [vmem:[%s280_s20] sm:$0xff] %vm1298_vm3, %v1785_v52 }
 0x1d5 PF: > { %s17_s21 = sadd.s32 1, %s2111_s21  }
 0x1d6   : > { %p14_p4 = scmp.ge.s32.totalorder %s17_s21, 4  }
 0x1d8   :  { %16 = sbr.rel (!%p14_p4) target bundleno = 1 (0x1), region = 90 }

// kernel: gat_forward.6
= control target key start
LH: loop header
LB: loop body
LE: loop exit
PB: predicated region body
PF: predicated region fallthrough
CT: control target
= control target key end

     0   :  { %s2204_s21 = smov 0   ;;  %s2371_s0 = inlined_call_operand.vmem [shape: f32[32,16], index: 0, kind: input, shape index: {}]   ;;  %s2372_s1 = inlined_call_operand.vmem [shape: f32[16,16], index: 1, kind: input, shape index: {}]   ;;  %s2373_s2 = inlined_call_operand.vmem [shape: f32[16,2], index: 2, kind: input, shape index: {}]   ;;  %s2374_s3 = inlined_call_operand.vmem [shape: f32[16,2], index: 3, kind: input, shape index: {}]   ;;  %s2375_s4 = inlined_call_operand.vmem [shape: f32[32,16], index: 4, kind: output, shape index: {0}]   ;;  %s2376_s5 = inlined_call_operand.vmem [shape: f32[32,2], index: 5, kind: output, shape index: {1}]   ;;  %s2377_s6 = inlined_call_operand.vmem [shape: f32[32,2], index: 6, kind: output, shape index: {2}]  }
   0x1 LB: > { %s1940_s22 = sadd.s32 4294967295, %s2167_s21   ;;  %p1944_p0 = scmp.ge.s32.totalorder %s2167_s21, 1  ;;  %s2167_s21 = sphi %s2204_s21, %s17_s21  }
   0x2   : > { %p218_p1 = scmp.lt.s32.totalorder %s2167_s21, 3 }
   0x4   : > { %p219_p2 = pnand %p1944_p0, %p218_p1 }
   0x5   : > { %s1945_s27 = sshll.u32 (!%p219_p2), %s1940_s22, 1 }
   0x6   : > { %222 = sbr.rel (%p219_p2) target bundleno = 475 (0x1db), region = 36  ;;  %p259_p3 = scmp.lt.s32.totalorder (!%p219_p2), %s1945_s27, 3 }
   0xb   : > { %v285_v0 = vld [vmem:[%s2372_s1 + $0x8] sm:$0xff]  ;;  %v284_v1 = vld [vmem:[%s2372_s1] sm:$0xff]  ;;  %s2379_s27 = smov (!%p259_p3, %s1945_s27), 3  ;;  %vm286_vm0 = vcmask 130048   ;;  %vm1307_vm1 = vcmask 15360  }
   0xc   : > { %v322_v2 = vand.u32 4294901760, %v285_v0  ;;  %v325_v3 = vand.u32 4294901760, %v284_v1  ;;  %s2218_s28 = sshll.u32 %s2379_s27, 3  ;;  %v798_v26 = vld [vmem:[%s2373_s2 + $0x8] sm:$0xff]  ;;  %v797_v28 = vld [vmem:[%s2373_s2] sm:$0xff] }
   0xd   : > { %s262_s7 = scalar_lea.vmem %s2371_s0, %s2218_s28  ;;  %v2229_v27 = vand.u32 4294901760, %v798_v26  ;;  %v2237_v30 = vand.u32 4294901760, %v797_v28  ;;  %v1311_v48 = vld [vmem:[%s2374_s3 + $0x8] sm:$0xff]  ;;  %v1310_v55 = vld [vmem:[%s2374_s3] sm:$0xff]  ;;  %s268_s18 = scalar_lea.vmem %s2375_s4, %s2218_s28 }
   0xe   : > { %2027 = vmatprep.subr.mxu0 %v322_v2  ;;  %v410_v4 = vsub.f32 %v285_v0, %v322_v2  ;;  %v417_v5 = vsub.f32 %v284_v1, %v325_v3  ;;  %v282_v10 = vld [vmem:[%s262_s7] sm:$0xff]  ;;  %v283_v11 = vld [vmem:[%s262_s7 + $0x8] sm:$0xff]  ;;  %v2261_v54 = vand.u32 4294901760, %v1311_v48  ;;  %v2266_v61 = vand.u32 4294901760, %v1310_v55  ;;  %s274_s22 = scalar_lea.vmem %s2376_s5, %s2218_s28  ;;  %s280_s25 = scalar_lea.vmem %s2377_s6, %s2218_s28 }
   0xf   : > { %2028 = vmatpush3.msra.mxu0 %v322_v2  ;;  %v288_v12 = vsel %vm286_vm0, %v282_v10, 0  ;;  %v291_v13 = vsel %vm286_vm0, %v283_v11, 0  ;;  %v2235_v29 = vsub.f32 %v798_v26, %v2229_v27  ;;  %v2245_v32 = vsub.f32 %v797_v28, %v2237_v30 }
  0x10   : > { %v411_v6 = vand.u32 4294901760, %v410_v4  ;;  %2029 = vmatprep.subr.mxu0 %v325_v3  ;;  %v418_v7 = vand.u32 4294901760, %v417_v5  ;;  %v360_v16 = vand.u32 4294901760, %v288_v12  ;;  %v370_v17 = vand.u32 4294901760, %v291_v13 }
  0x11   : > { %2030 = vmatpush3.msra.mxu0 %v325_v3  ;;  %v2242_v31 = vand.u32 4294901760, %v2235_v29  ;;  %v2252_v34 = vand.u32 4294901760, %v2245_v32  ;;  %v2273_v63 = vsub.f32 %v1311_v48, %v2261_v54 }
  0x12   : > { %v412_v8 = vsub.f32 %v410_v4, %v411_v6  ;;  %v419_v9 = vsub.f32 %v417_v5, %v418_v7  ;;  %2041 = vmatprep.subr.mxu0 %v410_v4  ;;  %v361_v18 = vsub.f32 %v288_v12, %v360_v16  ;;  %2038 = vmatprep.mubr.f32.mxu1 %v360_v16 }
  0x13   : > { %v371_v19 = vsub.f32 %v291_v13, %v370_v17  ;;  %v924_v33 = vsub.f32 %v2235_v29, %v2242_v31  ;;  %v931_v36 = vsub.f32 %v2245_v32, %v2252_v34 }
  0x14   : > { %v413_v14 = vand.u32 4294901760, %v412_v8  ;;  %v420_v15 = vand.u32 4294901760, %v419_v9  ;;  %v362_v20 = vand.u32 4294901760, %v361_v18 }
  0x15   : > { %v372_v21 = vand.u32 4294901760, %v371_v19  ;;  %v925_v35 = vand.u32 4294901760, %v924_v33  ;;  %v932_v37 = vand.u32 4294901760, %v931_v36 }
  0x16   : > { %2034 = vmatprep.subr.mxu1 %v413_v14  ;;  %v363_v22 = vsub.f32 %v361_v18, %v362_v20 }
  0x17   : > { %2035 = vmatpush3.msra.mxu1 %v413_v14  ;;  %v373_v23 = vsub.f32 %v371_v19, %v372_v21 }
  0x18   : > { %2036 = vmatprep.subr.mxu1 %v420_v15  ;;  %v364_v24 = vand.u32 4294901760, %v363_v22 }
  0x19   : > { %2037 = vmatpush3.msra.mxu1 %v420_v15  ;;  %v374_v25 = vand.u32 4294901760, %v373_v23 }
  0x1a   : > { %2039 = vmatmul.mubr.f32.vlgmr.msra.gmra.mxu1 %v370_v17  ;;  %2048 = vmatprep.subr.mxu1 %v322_v2 }
  0x1b   : > { %2049 = vmatpush3.msra.mxu1 %v322_v2  ;;  %2052 = vmatprep.mubr.f32.mxu1 %v362_v20 }
  0x1c   : > { %2050 = vmatprep.subr.mxu1 %v325_v3  ;;  %2031 = vmatprep.mubr.f32.mxu0 %v364_v24 }
  0x1d   : > { %2051 = vmatpush3.msra.mxu1 %v325_v3  ;;  %2032 = vmatmul.mubr.f32.vlgmr.msra.gmra.mxu0 %v374_v25 }
  0x1e   : > { %2053 = vmatmul.mubr.f32.vlgmr.msra.gmra.mxu1 %v372_v21  ;;  %2062 = vmatprep.subr.mxu1 %v322_v2 }
  0x1f   : > { %2042 = vmatpush3.msra.mxu0 %v410_v4  ;;  %2045 = vmatprep.mubr.f32.mxu0 %v361_v18  ;;  %v2281_v4 = vsub.f32 %v1310_v55, %v2266_v61 }
  0x20   : > { %2043 = vmatprep.subr.mxu0 %v417_v5  ;;  %2063 = vmatpush3.msra.mxu1 %v322_v2 }
  0x21   : > { %2044 = vmatpush3.msra.mxu0 %v417_v5  ;;  %2064 = vmatprep.subr.mxu1 %v325_v3  ;;  %v2299_v10 = vand.u32 4294901760, %v2281_v4 }
  0x22   : > { %2055 = vmatprep.subr.mxu0 %v411_v6  ;;  %2046 = vmatmul.mubr.f32.vlgmr.msra.gmra.mxu0 %v371_v19 }
  0x23   : > { %2056 = vmatpush3.msra.mxu0 %v411_v6  ;;  %2059 = vmatprep.mubr.f32.mxu0 %v360_v16  ;;  %v1438_v15 = vsub.f32 %v2281_v4, %v2299_v10 }
  0x24   : > { %2057 = vmatprep.subr.mxu0 %v418_v7  ;;  %2065 = vmatpush3.msra.mxu1 %v325_v3 }
  0x25   : > { %2058 = vmatpush3.msra.mxu0 %v418_v7  ;;  %2066 = vmatprep.mubr.f32.mxu1 %v360_v16  ;;  %v2290_v7 = vand.u32 4294901760, %v2273_v63  ;;  %v1439_v19 = vand.u32 4294901760, %v1438_v15 }
  0x26   : > { %2060 = vmatmul.mubr.f32.vlgmr.msra.gmra.mxu0 %v370_v17  ;;  %2067 = vmatmul.mubr.f32.vlgmr.msra.gmra.mxu1 %v370_v17 }
  0x27   : > { %2069 = vmatprep.subr.mxu0 %v2229_v27  ;;  %2076 = vmatprep.subr.mxu1 %v925_v35  ;;  %v1431_v12 = vsub.f32 %v2273_v63, %v2290_v7 }
  0x28   : > { %2070 = vmatpush3.msra.mxu0 %v2229_v27  ;;  %2077 = vmatpush3.msra.mxu1 %v925_v35 }
  0x29   : > { %2071 = vmatprep.subr.mxu0 %v2237_v30  ;;  %2078 = vmatprep.subr.mxu1 %v932_v37  ;;  %v1432_v17 = vand.u32 4294901760, %v1431_v12 }
  0x2a   : > { %2072 = vmatpush3.msra.mxu0 %v2237_v30  ;;  %2079 = vmatpush3.msra.mxu1 %v932_v37 }
  0x2b   : > { %2083 = vmatprep.subr.mxu0 %v2235_v29  ;;  %2090 = vmatprep.subr.mxu1 %v2229_v27 }
  0xda   : > { %v2040_v38 = vpop.f32.mrf.mxu1 }
  0xdc   : > { %v457_v39 = vpop.f32.mrf.mxu1 }
  0xdd   : > { %v2033_v40 = vpop.f32.mrf.mxu0 }
  0xde   : > { %v2054_v41 = vpop.f32.mrf.mxu1  ;;  %v464_v43 = vadd.f32 %v2040_v38, %v2033_v40 }
  0xdf   : > { %v366_v42 = vpop.f32.mrf.mxu0 }
  0xe0   : > { %v621_v45 = vpop.f32.mrf.mxu1  ;;  %v458_v46 = vadd.f32 %v457_v39, %v366_v42 }
  0xe2   : > { %v2047_v44 = vpop.f32.mrf.mxu0 }
  0xe3   : > { %v547_v47 = vadd.f32 %v2047_v44, %v464_v43 }
  0xe4   : > { %v539_v49 = vpop.f32.mrf.mxu0 }
  0xe5   : > { %v630_v50 = vadd.f32 %v2054_v41, %v547_v47  ;;  %v540_v51 = vadd.f32 %v539_v49, %v458_v46 }
  0xe6   : > { %v2061_v52 = vpop.f32.mrf.mxu0  ;;  %v2068_v53 = vpop.f32.mrf.mxu1 }
  0xe7   : > { %v622_v56 = vadd.f32 %v621_v45, %v540_v51  ;;  %v713_v57 = vadd.f32 %v2061_v52, %v630_v50 }
  0xe8   : > { %v706_v58 = vpop.f32.mrf.mxu0  ;;  %v785_v62 = vpop.f32.mrf.mxu1 }
  0xe9   : > { %v792_v59 = vadd.f32 %v2068_v53, %v713_v57  ;;  %v707_v60 = vadd.f32 %v706_v58, %v622_v56 }
  0xeb   : > { %v803_v0 = vsel %vm286_vm0, %v792_v59, 0  ;;  %v786_v1 = vadd.f32 %v785_v62, %v707_v60  ;;  %796 = vst.msk [vmem:[%s268_s18 + $0x8] sm:$0xff] %vm286_vm0, %v792_v59 }
  0xec   : > { %v2276_v2 = vand.u32 4294901760, %v803_v0 }
  0xed   : > { %795 = vst.msk [vmem:[%s268_s18] sm:$0xff] %vm286_vm0, %v786_v1  ;;  %v800_v3 = vsel %vm286_vm0, %v786_v1, 0 }
  0xee   : > { %v2284_v5 = vsub.f32 %v803_v0, %v2276_v2  ;;  %v2287_v6 = vand.u32 4294901760, %v800_v3 }
  0xf0   : > { %v2293_v8 = vsub.f32 %v800_v3, %v2287_v6  ;;  %2080 = vmatprep.mubr.f32.mxu1 %v2287_v6  ;;  %v884_v9 = vand.u32 4294901760, %v2284_v5 }
  0xf1   : > { %2081 = vmatmul.mubr.f32.vlgmr.msra.gmra.mxu1 %v2276_v2 }
  0xf2   : > { %2091 = vmatpush3.msra.mxu1 %v2229_v27  ;;  %v874_v11 = vand.u32 4294901760, %v2293_v8  ;;  %v885_v13 = vsub.f32 %v2284_v5, %v884_v9 }
  0xf3   : > { %2092 = vmatprep.subr.mxu1 %v2237_v30 }
  0xf4   : > { %2093 = vmatpush3.msra.mxu1 %v2237_v30  ;;  %2094 = vmatprep.mubr.f32.mxu1 %v874_v11  ;;  %v875_v14 = vsub.f32 %v2293_v8, %v874_v11  ;;  %v886_v18 = vand.u32 4294901760, %v885_v13 }
  0xf5   : > { %2095 = vmatmul.mubr.f32.vlgmr.msra.gmra.mxu1 %v884_v9  ;;  %2104 = vmatprep.subr.mxu1 %v2229_v27 }
  0xf6   : > { %2105 = vmatpush3.msra.mxu1 %v2229_v27  ;;  %2108 = vmatprep.mubr.f32.mxu1 %v2287_v6  ;;  %v876_v16 = vand.u32 4294901760, %v875_v14 }
  0xf7   : > { %2106 = vmatprep.subr.mxu1 %v2237_v30 }
  0xf8   : > { %2073 = vmatprep.mubr.f32.mxu0 %v876_v16  ;;  %2107 = vmatpush3.msra.mxu1 %v2237_v30 }
  0xf9   : > { %2074 = vmatmul.mubr.f32.vlgmr.msra.gmra.mxu0 %v886_v18  ;;  %2109 = vmatmul.mubr.f32.vlgmr.msra.gmra.mxu1 %v2276_v2 }
  0xfa   : > { %2084 = vmatpush3.msra.mxu0 %v2235_v29  ;;  %2118 = vmatprep.subr.mxu1 %v1432_v17 }
  0xfb   : > { %2085 = vmatprep.subr.mxu0 %v2245_v32  ;;  %2087 = vmatprep.mubr.f32.mxu0 %v2293_v8 }
  0xfc   : > { %2119 = vmatpush3.msra.mxu1 %v1432_v17  ;;  %2122 = vmatprep.mubr.f32.mxu1 %v2287_v6 }
  0xfd   : > { %2086 = vmatpush3.msra.mxu0 %v2245_v32  ;;  %2120 = vmatprep.subr.mxu1 %v1439_v19 }
  0xfe   : > { %2097 = vmatprep.subr.mxu0 %v2242_v31  ;;  %2121 = vmatpush3.msra.mxu1 %v1439_v19 }
  0xff   : > { %2088 = vmatmul.mubr.f32.vlgmr.msra.gmra.mxu0 %v2284_v5  ;;  %2123 = vmatmul.mubr.f32.vlgmr.msra.gmra.mxu1 %v2276_v2 }
 0x100   : > { %2098 = vmatpush3.msra.mxu0 %v2242_v31  ;;  %2132 = vmatprep.subr.mxu1 %v2261_v54 }
 0x101   : > { %2099 = vmatprep.subr.mxu0 %v2252_v34  ;;  %2101 = vmatprep.mubr.f32.mxu0 %v2287_v6 }
 0x102   : > { %2133 = vmatpush3.msra.mxu1 %v2261_v54  ;;  %2136 = vmatprep.mubr.f32.mxu1 %v874_v11 }
 0x103   : > { %2100 = vmatpush3.msra.mxu0 %v2252_v34  ;;  %2134 = vmatprep.subr.mxu1 %v2266_v61 }
 0x104   : > { %2111 = vmatprep.subr.mxu0 %v2261_v54  ;;  %2135 = vmatpush3.msra.mxu1 %v2266_v61 }
 0x105   : > { %2102 = vmatmul.mubr.f32.vlgmr.msra.gmra.mxu0 %v2276_v2  ;;  %2137 = vmatmul.mubr.f32.vlgmr.msra.gmra.mxu1 %v884_v9 }
 0x106   : > { %2112 = vmatpush3.msra.mxu0 %v2261_v54  ;;  %2146 = vmatprep.subr.mxu1 %v2261_v54 }
 0x107   : > { %2113 = vmatprep.subr.mxu0 %v2266_v61  ;;  %2115 = vmatprep.mubr.f32.mxu0 %v876_v16 }
 0x108   : > { %2147 = vmatpush3.msra.mxu1 %v2261_v54  ;;  %2150 = vmatprep.mubr.f32.mxu1 %v2287_v6 }
 0x109   : > { %2114 = vmatpush3.msra.mxu0 %v2266_v61  ;;  %2148 = vmatprep.subr.mxu1 %v2266_v61 }
 0x10a   : > { %2125 = vmatprep.subr.mxu0 %v2273_v63  ;;  %2149 = vmatpush3.msra.mxu1 %v2266_v61 }
 0x10b   : > { %2116 = vmatmul.mubr.f32.vlgmr.msra.gmra.mxu0 %v886_v18  ;;  %2151 = vmatmul.mubr.f32.vlgmr.msra.gmra.mxu1 %v2276_v2 }
 0x10c   : > { %2126 = vmatpush3.msra.mxu0 %v2273_v63  ;;  %2129 = vmatprep.mubr.f32.mxu0 %v2293_v8 }
 0x10d   : > { %2127 = vmatprep.subr.mxu0 %v2281_v4 }
 0x10e   : > { %2128 = vmatpush3.msra.mxu0 %v2281_v4 }
 0x10f   : > { %2139 = vmatprep.subr.mxu0 %v2290_v7  ;;  %2130 = vmatmul.mubr.f32.vlgmr.msra.gmra.mxu0 %v2284_v5 }
 0x110   : > { %2140 = vmatpush3.msra.mxu0 %v2290_v7  ;;  %2143 = vmatprep.mubr.f32.mxu0 %v2287_v6 }
 0x111   : > { %2141 = vmatprep.subr.mxu0 %v2299_v10 }
 0x112   : > { %2142 = vmatpush3.msra.mxu0 %v2299_v10 }
 0x113   : > { %2144 = vmatmul.mubr.f32.vlgmr.msra.gmra.mxu0 %v2276_v2 }
 0x1b1   : > { %v2082_v20 = vpop.f32.mrf.mxu1 }
 0x1b3   : > { %v969_v21 = vpop.f32.mrf.mxu1 }
 0x1b5   : > { %v2096_v22 = vpop.f32.mrf.mxu1 }
 0x1b7   : > { %v1133_v23 = vpop.f32.mrf.mxu1 }
 0x1b9   : > { %v2075_v24 = vpop.f32.mrf.mxu0  ;;  %v2110_v25 = vpop.f32.mrf.mxu1 }
 0x1ba   : > { %v976_v27 = vadd.f32 %v2082_v20, %v2075_v24 }
 0x1bb   : > { %v878_v26 = vpop.f32.mrf.mxu0  ;;  %v1297_v28 = vpop.f32.mrf.mxu1 }
 0x1bc   : > { %v970_v30 = vadd.f32 %v969_v21, %v878_v26 }
 0x1bf   : > { %v2089_v29 = vpop.f32.mrf.mxu0  ;;  %v2124_v34 = vpop.f32.mrf.mxu1 }
 0x1c0   : > { %v1059_v31 = vadd.f32 %v2089_v29, %v976_v27 }
 0x1c1   : > { %v1051_v32 = vpop.f32.mrf.mxu0  ;;  %v1476_v38 = vpop.f32.mrf.mxu1 }
 0x1c2   : > { %v1052_v33 = vadd.f32 %v1051_v32, %v970_v30  ;;  %v1142_v35 = vadd.f32 %v2096_v22, %v1059_v31 }
 0x1c4   : > { %v1134_v36 = vadd.f32 %v1133_v23, %v1052_v33 }
 0x1c5   : > { %v2103_v37 = vpop.f32.mrf.mxu0  ;;  %v2138_v44 = vpop.f32.mrf.mxu1 }
 0x1c6   : > { %v1225_v39 = vadd.f32 %v2103_v37, %v1142_v35 }
 0x1c7   : > { %v1218_v40 = vpop.f32.mrf.mxu0  ;;  %v1640_v48 = vpop.f32.mrf.mxu1 }
 0x1c8   : > { %v1219_v41 = vadd.f32 %v1218_v40, %v1134_v36  ;;  %v1304_v43 = vadd.f32 %v2110_v25, %v1225_v39 }
 0x1ca   : > { %v1298_v42 = vadd.f32 %v1297_v28, %v1219_v41  ;;  %1309 = vst.msk [vmem:[%s274_s22 + $0x8] sm:$0xff] %vm1307_vm1, %v1304_v43 }
 0x1cb   : > { %v2117_v45 = vpop.f32.mrf.mxu0  ;;  %v2152_v55 = vpop.f32.mrf.mxu1 }
 0x1cc   : > { %1308 = vst.msk [vmem:[%s274_s22] sm:$0xff] %vm1307_vm1, %v1298_v42  ;;  %v1483_v47 = vadd.f32 %v2124_v34, %v2117_v45 }
 0x1cd   : > { %v1385_v46 = vpop.f32.mrf.mxu0  ;;  %v1804_v61 = vpop.f32.mrf.mxu1 }
 0x1ce   : > { %v1477_v50 = vadd.f32 %v1476_v38, %v1385_v46 }
 0x1cf   : > { %v2131_v49 = vpop.f32.mrf.mxu0 }
 0x1d0   : > { %v1566_v51 = vadd.f32 %v2131_v49, %v1483_v47 }
 0x1d1   : > { %v1558_v52 = vpop.f32.mrf.mxu0 }
 0x1d2   : > { %v1559_v53 = vadd.f32 %v1558_v52, %v1477_v50  ;;  %v1649_v54 = vadd.f32 %v2138_v44, %v1566_v51 }
 0x1d3   : > { %v2145_v56 = vpop.f32.mrf.mxu0 }
 0x1d4   : > { %v1641_v57 = vadd.f32 %v1640_v48, %v1559_v53  ;;  %v1732_v58 = vadd.f32 %v2145_v56, %v1649_v54 }
 0x1d5   : > { %v1725_v59 = vpop.f32.mrf.mxu0 }
 0x1d6   : > { %v1726_v60 = vadd.f32 %v1725_v59, %v1641_v57  ;;  %v1811_v63 = vadd.f32 %v2152_v55, %v1732_v58 }
 0x1d8   : > { %v1805_v62 = vadd.f32 %v1804_v61, %v1726_v60  ;;  %1815 = vst.msk [vmem:[%s280_s25 + $0x8] sm:$0xff] %vm1307_vm1, %v1811_v63 }
 0x1da   : > { %1814 = vst.msk [vmem:[%s280_s25] sm:$0xff] %vm1307_vm1, %v1805_v62 }
 0x1db PF: > { %s17_s21 = sadd.s32 1, %s2167_s21  }
 0x1dc   : > { %p14_p4 = scmp.ge.s32.totalorder %s17_s21, 4  }
 0x1de   :  { %16 = sbr.rel (!%p14_p4) target bundleno = 1 (0x1), region = 90 }

// kernel: gat_forward.7
= control target key start
LH: loop header
LB: loop body
LE: loop exit
PB: predicated region body
PF: predicated region fallthrough
CT: control target
= control target key end

     0   :  { %s1762_s15 = smov 0   ;;  %s2024_s0 = inlined_call_operand.vmem [shape: f32[32,16], index: 0, kind: input, shape index: {}]   ;;  %s2025_s1 = inlined_call_operand.vmem [shape: f32[2,32], index: 1, kind: input, shape index: {}]   ;;  %s2026_s2 = inlined_call_operand.vmem [shape: f32[32,2], index: 2, kind: input, shape index: {}]   ;;  %s2027_s3 = inlined_call_operand.vmem [shape: bf16[32,32], index: 3, kind: input, shape index: {}]   ;;  %s2028_s4 = inlined_call_operand.vmem [shape: f32[32,16], index: 4, kind: output, shape index: {}]  }
   0x1 LB: > { %s1470_s16 = sadd.s32 4294967295, %s1731_s15   ;;  %p1474_p0 = scmp.ge.s32.totalorder %s1731_s15, 1  ;;  %s1731_s15 = sphi %s1762_s15, %s14_s15  }
   0x2   : > { %p163_p1 = scmp.lt.s32.totalorder %s1731_s15, 3 }
   0x4   : > { %p164_p2 = pnand %p1474_p0, %p163_p1 }
   0x5   : > { %s1479_s17 = sshll.u32 (!%p164_p2), %s1470_s16, 4  ;;  %s1475_s29 = sshll.u32 (!%p164_p2), %s1470_s16, 1 }
   0x6   : > { %167 = sbr.rel (%p164_p2) target bundleno = 683 (0x2ab), region = 36  ;;  %s202_s20 = scalar_lea.vmem (!%p164_p2), %s2026_s2, %s1479_s17 }
   0x7   : > { %p190_p3 = scmp.lt.s32.totalorder (!%p164_p2), %s1475_s29, 3  ;;  %s1735_s12 = smov (!%p164_p2), 120  }
   0x8   : > { %s1736_s13 = smov (!%p164_p2), 8  }
   0xb   : > { %v1733_v0 = vmov 0   ;;  %v1734_v1 = vmov 1   ;;  %v203_v2 = vld [vmem:[%s202_s20] sm:$0xff]  ;;  %v204_v3 = vld [vmem:[%s202_s20 + $0x8] sm:$0xff]  ;;  %v1778_v4 = vld [vmem:[%s2024_s0 + $0x18] sm:$0xff]  ;;  %s2030_s29 = smov (!%p190_p3, %s1475_s29), 3 }
   0xc   : > { %1706 = vset.pattern.permute.xlu0 %v1733_v0  ;;  %1707 = vset.pattern.permute.xlu1 %v1734_v1  ;;  %v1781_v5 = vand.u32 4294901760, %v1778_v4  ;;  %v1788_v6 = vld [vmem:[%s2024_s0 + $0x10] sm:$0xff]  ;;  %v1796_v8 = vld [vmem:[%s2024_s0 + $0x8] sm:$0xff]  ;;  %v1806_v10 = vld [vmem:[%s2024_s0] sm:$0xff]  ;;  %s1476_s30 = sshll.u32 %s2030_s29, 2  ;;  %vm240_vm0 = vcmask 261120  }
   0xd   : > { %220 = vperm.xlu0 %1706, %v203_v2   ;;  %803 = vperm.xlu1 %1707, %v203_v2   ;;  %v1791_v7 = vand.u32 4294901760, %v1788_v6  ;;  %v1799_v9 = vand.u32 4294901760, %v1796_v8  ;;  %v1810_v11 = vand.u32 4294901760, %v1806_v10  ;;  %s193_s7 = scalar_lea.vmem %s2027_s3, %s1476_s30  ;;  %v1482_v15 = vld [vmem:[%s2025_s1] ss:$0 sm:$0xff]  ;;  %s1478_s14 = sshll.u32 %s2030_s29, 3 }
   0xe   : > { %1562 = vmatprep.subr.mxu0 %v1781_v5  ;;  %v1815_v12 = vsub.f32 %v1778_v4, %v1781_v5  ;;  %v1487_v13 = vld [vmem:[%s193_s7] sm:$0xff]   ;;  %vm1406_vm1 = vcmask 64512   ;;  %s199_s18 = scalar_lea.vmem %s2028_s4, %s1478_s14  ;;  %vm1409_vm2 = vcmask 130048  }
   0xf   : > { %1563 = vmatpush3.msra.mxu0 %v1781_v5  ;;  %v1488_v14 = vunpack.c.l.bf16 %v1487_v13  ;;  %v1483_v16 = vld [vmem:[%s2025_s1 + $0x1] ss:$0 sm:$0xff]  ;;  %v1489_v17 = vunpack.c.h.bf16 %v1487_v13  ;;  %v1840_v46 = vsub.f32 %v1796_v8, %v1799_v9  ;;  %v1844_v47 = vsub.f32 %v1788_v6, %v1791_v7 }
  0x10   : > { %1564 = vmatprep.subr.mxu0 %v1791_v7  ;;  %v1848_v48 = vand.u32 4294901760, %v1815_v12  ;;  %v1858_v51 = vsub.f32 %v1806_v10, %v1810_v11 }
  0x11   : > { %225 = vperm.xlu0 %1706, %v204_v3   ;;  %807 = vperm.xlu1 %1707, %v204_v3   ;;  %v1480_v18 = vadd.f32 -1.0, %v1488_v14  ;;  %v1481_v23 = vadd.f32 -1.0, %v1489_v17  ;;  %v1851_v49 = vand.u32 4294901760, %v1844_v47  ;;  %v1854_v50 = vand.u32 4294901760, %v1840_v46 }
  0x12   : > { %1565 = vmatpush3.msra.mxu0 %v1791_v7  ;;  %v382_v52 = vsub.f32 %v1815_v12, %v1848_v48  ;;  %v1868_v58 = vand.u32 4294901760, %v1858_v51 }
  0x13   : > { %1566 = vmatprep.subr.mxu0 %v1799_v9  ;;  %v211_v26 = vmul.f32 1e+30, %v1480_v18  ;;  %v212_v33 = vmul.f32 1e+30, %v1481_v23  ;;  %v389_v53 = vsub.f32 %v1844_v47, %v1851_v49  ;;  %v396_v54 = vsub.f32 %v1840_v46, %v1854_v50 }
  0x14   : > { %1567 = vmatpush3.msra.mxu0 %v1799_v9  ;;  %v383_v55 = vand.u32 4294901760, %v382_v52  ;;  %v403_v59 = vsub.f32 %v1858_v51, %v1868_v58 }
  0x15   : > { %1708 = vset.pattern.permute.xlu0 %v1734_v1  ;;  %1568 = vmatprep.subr.mxu0 %v1810_v11  ;;  %v390_v56 = vand.u32 4294901760, %v389_v53  ;;  %v397_v57 = vand.u32 4294901760, %v396_v54 }
  0x16   : > { %1569 = vmatpush3.msra.mxu0 %v1810_v11  ;;  %1573 = vmatprep.subr.mxu1 %v383_v55  ;;  %v404_v60 = vand.u32 4294901760, %v403_v59 }
  0x17   : > { %1584 = vmatprep.subr.mxu0 %v1815_v12  ;;  %1574 = vmatpush3.msra.mxu1 %v383_v55 }
  0x18   : > { %1575 = vmatprep.subr.mxu1 %v390_v56 }
  0x19   : > { %1576 = vmatpush3.msra.mxu1 %v390_v56 }
  0x1a   : > { %1577 = vmatprep.subr.mxu1 %v397_v57 }
  0x1b   : > { %1578 = vmatpush3.msra.mxu1 %v397_v57 }
  0x1c   : > { %1579 = vmatprep.subr.mxu1 %v404_v60 }
  0x1d   : > { %1580 = vmatpush3.msra.mxu1 %v404_v60 }
  0x1e   : > { %1595 = vmatprep.subr.mxu1 %v1781_v5 }
  0x88   : > { %v221_v19 = vpop.permute.xlu0 %220  ;;  %v804_v20 = vpop.permute.xlu1 %803 }
  0x89   : > { %v232_v21 = vadd.f32 %v1482_v15, %v221_v19  ;;  %v814_v22 = vadd.f32 %v1483_v16, %v804_v20 }
  0x8b   : > { %v234_v24 = vmul.f32 0.2, %v232_v21  ;;  %v816_v25 = vmul.f32 0.2, %v814_v22 }
  0x8c   : > { %v226_v27 = vpop.permute.xlu0 %225  ;;  %v808_v28 = vpop.permute.xlu1 %807 }
  0x8d   : > { %v236_v29 = vmax.f32 %v232_v21, %v234_v24  ;;  %v818_v30 = vmax.f32 %v814_v22, %v816_v25  ;;  %v233_v31 = vadd.f32 %v1482_v15, %v226_v27  ;;  %v815_v32 = vadd.f32 %v1483_v16, %v808_v28 }
  0x8f   : > { %v235_v34 = vmul.f32 0.2, %v233_v31  ;;  %v817_v35 = vmul.f32 0.2, %v815_v32  ;;  %v238_v36 = vadd.f32 %v236_v29, %v211_v26  ;;  %v820_v37 = vadd.f32 %v818_v30, %v211_v26 }
  0x91   : > { %v237_v38 = vmax.f32 %v233_v31, %v235_v34  ;;  %v819_v39 = vmax.f32 %v815_v32, %v817_v35  ;;  %v241_v40 = vsel %vm240_vm0, %v238_v36, -inf  ;;  %v822_v42 = vsel %vm240_vm0, %v820_v37, -inf }
  0x92   : > { %242 = vmax.xlane.f32.xlu0 %v241_v40 }
  0x93   : > { %v239_v41 = vadd.f32 %v237_v38, %v212_v33  ;;  %v821_v43 = vadd.f32 %v819_v39, %v212_v33 }
  0x95   : > { %v244_v44 = vsel %vm240_vm0, %v239_v41, -inf  ;;  %v825_v45 = vsel %vm240_vm0, %v821_v43, -inf }
  0x96   : > { %245 = vmax.xlane.f32.xlu1 %v244_v44  ;;  %823 = vmax.xlane.f32.xlu0 %v822_v42 }
  0x9a   : > { %826 = vmax.xlane.f32.xlu0 %v825_v45 }
  0xa7   : > { %850 = vrot.lane.b32.xlu1 %v1778_v4, %s1735_s12 }
  0xab   : > { %846 = vrot.lane.b32.xlu1 %v1796_v8, %s1735_s12 }
  0xaf   : > { %844 = vrot.lane.b32.xlu1 %v1806_v10, %s1735_s12 }
  0xb0   : > { %848 = vrot.lane.b32.xlu0 %v1788_v6, %s1735_s12 }
 0x11b   : > { %v243_v61 = vpop.xlane.xlu0 %242 }
 0x11c   : > { %v247_v62 = vsub.f32 %v238_v36, %v243_v61 }
 0x11e   : > { %v249_v63 = vmul.f32 1.442695, %v247_v62 }
 0x11f   : > { %v246_v0 = vpop.xlane.xlu1 %245  ;;  %v824_v1 = vpop.xlane.xlu0 %823 }
 0x120   : > { %1709 = vpow2.f32 %v249_v63  ;;  %v248_v2 = vsub.f32 %v239_v41, %v246_v0  ;;  %v828_v3 = vsub.f32 %v820_v37, %v824_v1 }
 0x122   : > { %v251_v4 = vmul.f32 1.442695, %v248_v2  ;;  %v830_v8 = vmul.f32 1.442695, %v828_v3 }
 0x123   : > { %v827_v10 = vpop.xlane.xlu0 %826  ;;  %v851_v14 = vpop.permute.xlu1 %850 }
 0x124   : > { %1711 = vpow2.f32 %v251_v4  ;;  %v829_v6 = vsub.f32 %v821_v43, %v827_v10  ;;  %v1884_v26 = vand.u32 4294901760, %v851_v14 }
 0x125   : > { %1713 = vpow2.f32 %v830_v8 }
 0x126   : > { %v832_v13 = vmul.f32 1.442695, %v829_v6  ;;  %v1895_v36 = vsub.f32 %v851_v14, %v1884_v26 }
 0x127   : > { %v847_v22 = vpop.permute.xlu1 %846  ;;  %v849_v27 = vpop.permute.xlu0 %848 }
 0x128   : > { %1715 = vpow2.f32 %v832_v13  ;;  %v1892_v34 = vand.u32 4294901760, %v849_v27  ;;  %v1899_v38 = vand.u32 4294901760, %v847_v22  ;;  %v1911_v44 = vand.u32 4294901760, %v1895_v36 }
 0x12a   : > { %v1905_v41 = vsub.f32 %v849_v27, %v1892_v34  ;;  %v1914_v45 = vsub.f32 %v847_v22, %v1899_v38  ;;  %v979_v55 = vsub.f32 %v1895_v36, %v1911_v44 }
 0x12b   : > { %v845_v37 = vpop.permute.xlu1 %844 }
 0x12c   : > { %v1907_v43 = vand.u32 4294901760, %v845_v37  ;;  %v1925_v54 = vand.u32 4294901760, %v1905_v41 }
 0x12d   : > { %v1710_v15 = vpop.eup %1709 }
 0x12e   : > { %v260_v16 = vsel %vm240_vm0, %v1710_v15, 0  ;;  %v253_v32 = vsel %vm240_vm0, %v1710_v15, 0.0  ;;  %v1922_v53 = vsub.f32 %v845_v37, %v1907_v43  ;;  %v986_v56 = vsub.f32 %v1905_v41, %v1925_v54 }
 0x12f   : > { %v1876_v17 = vand.u32 4294901760, %v260_v16 }
 0x130   : > { %v1944_v57 = vand.u32 4294901760, %v1922_v53 }
 0x131   : > { %v1712_v18 = vpop.eup %1711  ;;  %1581 = vmatprep.mubr.f32.mxu1 %v1876_v17  ;;  %v335_v19 = vsub.f32 %v260_v16, %v1876_v17 }
 0x132   : > { %v1714_v20 = vpop.eup %1713  ;;  %v263_v21 = vsel %vm240_vm0, %v1712_v18, 0  ;;  %v256_v40 = vsel %vm240_vm0, %v1712_v18, 0.0  ;;  %v1000_v60 = vsub.f32 %v1922_v53, %v1944_v57 }
 0x133   : > { %v834_v23 = vsel %vm240_vm0, %v1714_v20, 0.0  ;;  %v1882_v24 = vand.u32 4294901760, %v263_v21  ;;  %v336_v25 = vand.u32 4294901760, %v335_v19  ;;  %v857_v52 = vsel %vm240_vm0, %v1714_v20, 0 }
 0x134   : > { %835 = vadd.xlane.f32.xlu0 %v834_v23 }
 0x135   : > { %v1716_v28 = vpop.eup %1715  ;;  %v345_v29 = vsub.f32 %v263_v21, %v1882_v24  ;;  %1582 = vmatmul.mubr.f32.vlgmr.msra.gmra.mxu1 %v1882_v24  ;;  %v337_v30 = vsub.f32 %v335_v19, %v336_v25 }
 0x136   : > { %1596 = vmatpush3.msra.mxu1 %v1781_v5  ;;  %1603 = vmatprep.mubr.f32.mxu1 %v336_v25  ;;  %v837_v31 = vsel %vm240_vm0, %v1716_v28, 0.0 }
 0x137   : > { %1597 = vmatprep.subr.mxu1 %v1791_v7  ;;  %838 = vadd.xlane.f32.xlu1 %v837_v31  ;;  %v338_v33 = vand.u32 4294901760, %v337_v30  ;;  %v346_v35 = vand.u32 4294901760, %v345_v29 }
 0x138   : > { %1598 = vmatpush3.msra.mxu1 %v1791_v7  ;;  %254 = vadd.xlane.f32.xlu0 %v253_v32 }
 0x139   : > { %1599 = vmatprep.subr.mxu1 %v1799_v9  ;;  %1570 = vmatprep.mubr.f32.mxu0 %v338_v33  ;;  %v347_v39 = vsub.f32 %v345_v29, %v346_v35 }
 0x13a   : > { %1600 = vmatpush3.msra.mxu1 %v1799_v9 }
 0x13b   : > { %1601 = vmatprep.subr.mxu1 %v1810_v11  ;;  %v348_v42 = vand.u32 4294901760, %v347_v39 }
 0x13c   : > { %1602 = vmatpush3.msra.mxu1 %v1810_v11  ;;  %257 = vadd.xlane.f32.xlu0 %v256_v40 }
 0x13d   : > { %1604 = vmatmul.mubr.f32.vlgmr.msra.gmra.mxu1 %v346_v35  ;;  %1617 = vmatprep.subr.mxu1 %v1781_v5 }
 0x13e   : > { %1571 = vmatmul.mubr.f32.vlgmr.msra.gmra.mxu0 %v348_v42  ;;  %1618 = vmatpush3.msra.mxu1 %v1781_v5  ;;  %v1932_v5 = vand.u32 4294901760, %v857_v52 }
 0x13f   : > { %1585 = vmatpush3.msra.mxu0 %v1815_v12  ;;  %1625 = vmatprep.mubr.f32.mxu1 %v1876_v17  ;;  %v1935_v12 = vand.u32 4294901760, %v1914_v45 }
 0x140   : > { %1586 = vmatprep.subr.mxu0 %v1844_v47  ;;  %1592 = vmatprep.mubr.f32.mxu0 %v335_v19  ;;  %v932_v59 = vsub.f32 %v857_v52, %v1932_v5 }
 0x141   : > { %1619 = vmatprep.subr.mxu1 %v1791_v7  ;;  %1587 = vmatpush3.msra.mxu0 %v1844_v47  ;;  %v980_v47 = vand.u32 4294901760, %v979_v55 }
 0x142   : > { %1620 = vmatpush3.msra.mxu1 %v1791_v7  ;;  %1588 = vmatprep.subr.mxu0 %v1840_v46  ;;  %v993_v7 = vsub.f32 %v1914_v45, %v1935_v12  ;;  %v933_v62 = vand.u32 4294901760, %v932_v59 }
 0x143   : > { %1621 = vmatprep.subr.mxu1 %v1799_v9  ;;  %1589 = vmatpush3.msra.mxu0 %v1840_v46  ;;  %v860_v46 = vsel %vm240_vm0, %v1716_v28, 0 }
 0x144   : > { %1622 = vmatpush3.msra.mxu1 %v1799_v9  ;;  %1590 = vmatprep.subr.mxu0 %v1858_v51  ;;  %v987_v9 = vand.u32 4294901760, %v986_v56  ;;  %v994_v61 = vand.u32 4294901760, %v993_v7  ;;  %v934_v63 = vsub.f32 %v932_v59, %v933_v62 }
 0x145   : > { %1623 = vmatprep.subr.mxu1 %v1810_v11  ;;  %1591 = vmatpush3.msra.mxu0 %v1858_v51  ;;  %v1960_v51 = vand.u32 4294901760, %v860_v46 }
 0x146   : > { %1624 = vmatpush3.msra.mxu1 %v1810_v11  ;;  %1593 = vmatmul.mubr.f32.vlgmr.msra.gmra.mxu0 %v345_v29  ;;  %v1001_v11 = vand.u32 4294901760, %v1000_v60  ;;  %v935_v0 = vand.u32 4294901760, %v934_v63 }
 0x147   : > { %1606 = vmatprep.subr.mxu0 %v1848_v48  ;;  %1626 = vmatmul.mubr.f32.vlgmr.msra.gmra.mxu1 %v1882_v24 }
 0x148   : > { %1639 = vmatprep.subr.mxu1 %v980_v47  ;;  %1607 = vmatpush3.msra.mxu0 %v1848_v48  ;;  %v942_v48 = vsub.f32 %v860_v46, %v1960_v51 }
 0x149   : > { %1614 = vmatprep.mubr.f32.mxu0 %v1876_v17  ;;  %1640 = vmatpush3.msra.mxu1 %v980_v47 }
 0x14a   : > { %1647 = vmatprep.mubr.f32.mxu1 %v1932_v5  ;;  %1608 = vmatprep.subr.mxu0 %v1851_v49 }
 0x14b   : > { %1641 = vmatprep.subr.mxu1 %v987_v9  ;;  %1609 = vmatpush3.msra.mxu0 %v1851_v49  ;;  %v943_v49 = vand.u32 4294901760, %v942_v48 }
 0x14c   : > { %1642 = vmatpush3.msra.mxu1 %v987_v9  ;;  %1610 = vmatprep.subr.mxu0 %v1854_v50 }
 0x14d   : > { %1643 = vmatprep.subr.mxu1 %v994_v61  ;;  %1611 = vmatpush3.msra.mxu0 %v1854_v50  ;;  %v944_v50 = vsub.f32 %v942_v48, %v943_v49 }
 0x14e   : > { %1644 = vmatpush3.msra.mxu1 %v994_v61  ;;  %1612 = vmatprep.subr.mxu0 %v1868_v58 }
 0x14f   : > { %1645 = vmatprep.subr.mxu1 %v1001_v11  ;;  %1613 = vmatpush3.msra.mxu0 %v1868_v58  ;;  %v945_v58 = vand.u32 4294901760, %v944_v50 }
 0x150   : > { %1646 = vmatpush3.msra.mxu1 %v1001_v11  ;;  %1615 = vmatmul.mubr.f32.vlgmr.msra.gmra.mxu0 %v1882_v24 }
 0x151   : > { %1628 = vmatprep.subr.mxu0 %v1884_v26  ;;  %1648 = vmatmul.mubr.f32.vlgmr.msra.gmra.mxu1 %v1960_v51 }
 0x152   : > { %1661 = vmatprep.subr.mxu1 %v1884_v26  ;;  %1629 = vmatpush3.msra.mxu0 %v1884_v26 }
 0x153   : > { %1636 = vmatprep.mubr.f32.mxu0 %v935_v0  ;;  %1662 = vmatpush3.msra.mxu1 %v1884_v26 }
 0x154   : > { %1669 = vmatprep.mubr.f32.mxu1 %v933_v62  ;;  %1630 = vmatprep.subr.mxu0 %v1892_v34 }
 0x155   : > { %1663 = vmatprep.subr.mxu1 %v1892_v34  ;;  %1631 = vmatpush3.msra.mxu0 %v1892_v34 }
 0x156   : > { %1664 = vmatpush3.msra.mxu1 %v1892_v34  ;;  %1632 = vmatprep.subr.mxu0 %v1899_v38 }
 0x157   : > { %1665 = vmatprep.subr.mxu1 %v1899_v38  ;;  %1633 = vmatpush3.msra.mxu0 %v1899_v38 }
 0x158   : > { %1666 = vmatpush3.msra.mxu1 %v1899_v38  ;;  %1634 = vmatprep.subr.mxu0 %v1907_v43 }
 0x159   : > { %1667 = vmatprep.subr.mxu1 %v1907_v43  ;;  %1635 = vmatpush3.msra.mxu0 %v1907_v43 }
 0x15a   : > { %1668 = vmatpush3.msra.mxu1 %v1907_v43  ;;  %1637 = vmatmul.mubr.f32.vlgmr.msra.gmra.mxu0 %v945_v58 }
 0x15b   : > { %1650 = vmatprep.subr.mxu0 %v1895_v36  ;;  %1670 = vmatmul.mubr.f32.vlgmr.msra.gmra.mxu1 %v943_v49 }
 0x15c   : > { %1683 = vmatprep.subr.mxu1 %v1884_v26  ;;  %1651 = vmatpush3.msra.mxu0 %v1895_v36 }
 0x15d   : > { %1658 = vmatprep.mubr.f32.mxu0 %v932_v59  ;;  %1684 = vmatpush3.msra.mxu1 %v1884_v26 }
 0x15e   : > { %1691 = vmatprep.mubr.f32.mxu1 %v1932_v5  ;;  %1652 = vmatprep.subr.mxu0 %v1905_v41 }
 0x15f   : > { %1685 = vmatprep.subr.mxu1 %v1892_v34  ;;  %1653 = vmatpush3.msra.mxu0 %v1905_v41 }
 0x160   : > { %1686 = vmatpush3.msra.mxu1 %v1892_v34  ;;  %1654 = vmatprep.subr.mxu0 %v1914_v45 }
 0x161   : > { %1687 = vmatprep.subr.mxu1 %v1899_v38  ;;  %1655 = vmatpush3.msra.mxu0 %v1914_v45 }
 0x162   : > { %1688 = vmatpush3.msra.mxu1 %v1899_v38  ;;  %1656 = vmatprep.subr.mxu0 %v1922_v53 }
 0x163   : > { %1689 = vmatprep.subr.mxu1 %v1907_v43  ;;  %1657 = vmatpush3.msra.mxu0 %v1922_v53 }
 0x164   : > { %1690 = vmatpush3.msra.mxu1 %v1907_v43  ;;  %1659 = vmatmul.mubr.f32.vlgmr.msra.gmra.mxu0 %v942_v48 }
 0x165   : > { %1672 = vmatprep.subr.mxu0 %v1911_v44  ;;  %1692 = vmatmul.mubr.f32.vlgmr.msra.gmra.mxu1 %v1960_v51 }
 0x166   : > { %1673 = vmatpush3.msra.mxu0 %v1911_v44  ;;  %1680 = vmatprep.mubr.f32.mxu0 %v1932_v5 }
 0x167   : > { %1674 = vmatprep.subr.mxu0 %v1925_v54 }
 0x168   : > { %1675 = vmatpush3.msra.mxu0 %v1925_v54 }
 0x169   : > { %1676 = vmatprep.subr.mxu0 %v1935_v12 }
 0x16a   : > { %1677 = vmatpush3.msra.mxu0 %v1935_v12 }
 0x16b   : > { %1678 = vmatprep.subr.mxu0 %v1944_v57 }
 0x16c   : > { %1679 = vmatpush3.msra.mxu0 %v1944_v57 }
 0x16d   : > { %1681 = vmatmul.mubr.f32.vlgmr.msra.gmra.mxu0 %v1960_v51 }
 0x1bd   : > { %v836_v30 = vpop.xlane.xlu0 %835 }
 0x1be   : > { %v1390_v33 = vmax.f32 %v836_v30, 1e-09 }
 0x1c0   : > { %v839_v28 = vpop.xlane.xlu1 %838 }
 0x1c1   : > { %v1391_v31 = vmax.f32 %v839_v28, 1e-09  ;;  %v255_v9 = vpop.xlane.xlu0 %254 }
 0x1c2   : > { %v793_v51 = vmax.f32 %v255_v9, 1e-09 }
 0x1c3   : > { %1717 = vrcp.f32 %v1391_v31 }
 0x1c4   : > { %1719 = vrcp.f32 %v1390_v33 }
 0x1c5   : > { %v258_v60 = vpop.xlane.xlu0 %257  ;;  %1721 = vrcp.f32 %v793_v51 }
 0x1c6   : > { %v794_v61 = vmax.f32 %v258_v60, 1e-09 }
 0x1c8   : > { %1723 = vrcp.f32 %v794_v61 }
 0x1d0   : > { %v1718_v56 = vpop.eup %1717 }
 0x1d1   : > { %v1720_v46 = vpop.eup %1719 }
 0x1d2   : > { %v1722_v62 = vpop.eup %1721 }
 0x1d5   : > { %v1724_v11 = vpop.eup %1723 }
 0x1f5   : > { %v1583_v1 = vpop.f32.mrf.mxu1 }
 0x1f7   : > { %v441_v4 = vpop.f32.mrf.mxu1 }
 0x1fd   : > { %v1605_v6 = vpop.f32.mrf.mxu1 }
 0x1fe   : > { %v1572_v2 = vpop.f32.mrf.mxu0 }
 0x1ff   : > { %v448_v3 = vadd.f32 %v1583_v1, %v1572_v2  ;;  %v611_v18 = vpop.f32.mrf.mxu1 }
 0x200   : > { %v340_v8 = vpop.f32.mrf.mxu0 }
 0x201   : > { %v442_v10 = vadd.f32 %v441_v4, %v340_v8 }
 0x206   : > { %v1594_v13 = vpop.f32.mrf.mxu0 }
 0x207   : > { %v535_v14 = vadd.f32 %v1594_v13, %v448_v3  ;;  %v1627_v20 = vpop.f32.mrf.mxu1 }
 0x208   : > { %v527_v15 = vpop.f32.mrf.mxu0 }
 0x209   : > { %v528_v16 = vadd.f32 %v527_v15, %v442_v10  ;;  %v620_v17 = vadd.f32 %v1605_v6, %v535_v14  ;;  %v783_v26 = vpop.f32.mrf.mxu1 }
 0x20b   : > { %v612_v19 = vadd.f32 %v611_v18, %v528_v16 }
 0x210   : > { %v1616_v21 = vpop.f32.mrf.mxu0 }
 0x211   : > { %v709_v22 = vadd.f32 %v1616_v21, %v620_v17  ;;  %v1649_v32 = vpop.f32.mrf.mxu1 }
 0x212   : > { %v702_v23 = vpop.f32.mrf.mxu0 }
 0x213   : > { %v790_v24 = vadd.f32 %v1627_v20, %v709_v22  ;;  %v703_v25 = vadd.f32 %v702_v23, %v612_v19  ;;  %v1038_v36 = vpop.f32.mrf.mxu1 }
 0x215   : > { %v784_v27 = vadd.f32 %v783_v26, %v703_v25  ;;  %v800_v49 = vmul.f32 %v1724_v11, %v790_v24 }
 0x217   : > { %v799_v48 = vmul.f32 %v1722_v62, %v784_v27 }
 0x21a   : > { %v1638_v29 = vpop.f32.mrf.mxu0 }
 0x21b   : > { %v1045_v37 = vadd.f32 %v1649_v32, %v1638_v29  ;;  %v1671_v38 = vpop.f32.mrf.mxu1 }
 0x21c   : > { %v937_v34 = vpop.f32.mrf.mxu0 }
 0x21d   : > { %v1039_v40 = vadd.f32 %v1038_v36, %v937_v34  ;;  %v1208_v43 = vpop.f32.mrf.mxu1 }
 0x224   : > { %v1660_v35 = vpop.f32.mrf.mxu0 }
 0x225   : > { %v1132_v41 = vadd.f32 %v1660_v35, %v1045_v37  ;;  %v1693_v45 = vpop.f32.mrf.mxu1 }
 0x226   : > { %v1124_v39 = vpop.f32.mrf.mxu0 }
 0x227   : > { %v1125_v42 = vadd.f32 %v1124_v39, %v1039_v40  ;;  %v1217_v44 = vadd.f32 %v1671_v38, %v1132_v41  ;;  %v1380_v57 = vpop.f32.mrf.mxu1 }
 0x229   : > { %v1209_v54 = vadd.f32 %v1208_v43, %v1125_v42 }
 0x22d   : > { %v1682_v52 = vpop.f32.mrf.mxu0 }
 0x22e   : > { %v1306_v53 = vadd.f32 %v1682_v52, %v1217_v44 }
 0x22f   : > { %v1299_v55 = vpop.f32.mrf.mxu0 }
 0x230   : > { %v1387_v5 = vadd.f32 %v1693_v45, %v1306_v53  ;;  %v1300_v12 = vadd.f32 %v1299_v55, %v1209_v54 }
 0x232   : > { %v1381_v47 = vadd.f32 %v1380_v57, %v1300_v12  ;;  %v1397_v7 = vmul.f32 %v1718_v56, %v1387_v5 }
 0x234   : > { %1402 = vrot.lane.b32.xlu0 %v1397_v7, %s1736_s13  ;;  %v1396_v59 = vmul.f32 %v1720_v46, %v1381_v47 }
 0x236   : > { %1400 = vrot.lane.b32.xlu1 %v1396_v59, %s1736_s13 }
 0x2a6   : > { %v1403_v63 = vpop.permute.xlu0 %1402 }
 0x2a7   : > { %v1408_v58 = vsel %vm1406_vm1, %v800_v49, %v1403_v63 }
 0x2a8   : > { %v1401_v0 = vpop.permute.xlu1 %1400  ;;  %1411 = vst.msk [vmem:[%s199_s18 + $0x8] sm:$0xff] %vm1409_vm2, %v1408_v58 }
 0x2a9   : > { %v1407_v50 = vsel %vm1406_vm1, %v799_v48, %v1401_v0 }
 0x2aa   : > { %1410 = vst.msk [vmem:[%s199_s18] sm:$0xff] %vm1409_vm2, %v1407_v50 }
 0x2ab PF: > { %s14_s15 = sadd.s32 1, %s1731_s15  }
 0x2ac   : > { %p11_p4 = scmp.ge.s32.totalorder %s14_s15, 4  }
 0x2ae   :  { %13 = sbr.rel (!%p11_p4) target bundleno = 1 (0x1), region = 67 }

</bundles_post_ra>
